<compile_context>
chip_gen: v7x
topology: tpu7x:2x2x1
jax: 0.10.0
libtpu: 0.0.40
codegen_flags: <defaults>
</compile_context>

<pallas_src>
import math

import jax
import jax.numpy as jnp
from jax.experimental import pallas as pl
from jax.experimental.pallas import tpu as pltpu

D_Z = 16        # d_z (d_model)
D_FF = 32       # dim_feedforward
N_LAYERS = 2    # num_layers
LN_EPS = 1e-5
LANE = 128      # lane width used for the packed parameter slabs


# ----------------------- static packed-parameter layout ----------------------

def _slab_layouts():
    """Static row layouts of the two packed parameter slabs.

    w_slab rows hold pre-transposed weight matrices (kernel never transposes),
    v_slab rows hold bias / layernorm vectors (one vector per row).
    """
    w_rows, v_rows = {}, {}
    wr, vr = 0, 0

    def add_w(name, rows, cols):
        nonlocal wr
        w_rows[name] = (wr, rows, cols)
        wr += rows

    def add_v(name, cols):
        nonlocal vr
        v_rows[name] = (vr, cols)
        vr += 1

    for l in range(N_LAYERS):
        add_w(f"sa_in_{l}", D_Z, 3 * D_Z)     # fused QKV (transposed): [D, 3D]
        add_w(f"sa_out_{l}", D_Z, D_Z)
        add_w(f"ca_in_{l}", D_Z, 3 * D_Z)
        add_w(f"ca_out_{l}", D_Z, D_Z)
        add_w(f"ff1_{l}", D_Z, D_FF)
        add_w(f"ff2_{l}", D_FF, D_Z)
        add_v(f"sa_in_b_{l}", 3 * D_Z)
        add_v(f"sa_out_b_{l}", D_Z)
        add_v(f"ca_in_b_{l}", 3 * D_Z)
        add_v(f"ca_out_b_{l}", D_Z)
        add_v(f"ff1_b_{l}", D_FF)
        add_v(f"ff2_b_{l}", D_Z)
        for n in ("n1", "n2", "n3"):
            add_v(f"{n}_w_{l}", D_Z)
            add_v(f"{n}_b_{l}", D_Z)
    add_w("head_diff", D_Z, 1)                # (head_w[1] - head_w[0])^T : [D, 1]
    add_v("head_b_diff", 1)                   # head_b[1] - head_b[0]

    w_total = ((wr + 7) // 8) * 8
    v_total = ((vr + 7) // 8) * 8
    return w_rows, w_total, v_rows, v_total


W_ROWS, W_TOTAL, V_ROWS, V_TOTAL = _slab_layouts()


# ----------------------------- kernel helpers --------------------------------

def _wmat(w_ref, name, col_lo=0, col_hi=None):
    """Static slice of a pre-transposed weight matrix out of the matrix slab."""
    r, nr, nc = W_ROWS[name]
    hi = nc if col_hi is None else col_hi
    return w_ref[r:r + nr, col_lo:hi]


def _vrow(v_ref, name, col_lo=0, col_hi=None):
    """Static slice of a bias / LN vector ([1, n]) out of the vector slab."""
    r, nc = V_ROWS[name]
    hi = nc if col_hi is None else col_hi
    return v_ref[r:r + 1, col_lo:hi]


def _mm(x2, w):
    """Flat 2-D matmul: x2 [R, K] @ w [K, N] -> [R, N] (single MXU push)."""
    return jnp.dot(x2, w, preferred_element_type=jnp.float32)


def _attend(q, k, v, scale):
    """Single-head batched attention: q [B,Sq,D], k/v [B,Sk,D] -> [B,Sq,D]."""
    s = jax.lax.dot_general(
        q, k, (((2,), (2,)), ((0,), (0,))),
        preferred_element_type=jnp.float32) * scale            # [B, Sq, Sk]
    s = s - jnp.max(s, axis=-1, keepdims=True)
    e = jnp.exp(s)
    a = e * pl.reciprocal(jnp.sum(e, axis=-1, keepdims=True), approx=True)
    return jax.lax.dot_general(
        a, v, (((2,), (1,)), ((0,), (0,))),
        preferred_element_type=jnp.float32)                    # [B, Sq, D]


def _ln(x, w_row, b_row):
    """LayerNorm over the last dim (biased variance, matches PyTorch)."""
    mu = jnp.mean(x, axis=-1, keepdims=True)
    xc = x - mu
    var = jnp.mean(xc * xc, axis=-1, keepdims=True)
    return xc * jax.lax.rsqrt(var + LN_EPS) * w_row + b_row


# ---------------------------------- kernel -----------------------------------

def mask_gen_kernel(src_ref, mem_ref, gd_ref, w_ref, v_ref, out_ref):
    bb, st, d = src_ref.shape
    sm = mem_ref.shape[1]
    scale = 1.0 / math.sqrt(d)

    # Flatten to [rows, D] once: every projection is a single full-sublane matmul.
    x = src_ref[...].reshape(bb * st, d)        # [bb*st, D]
    mem = mem_ref[...].reshape(bb * sm, d)      # [bb*sm, D]

    # Two post-norm TransformerDecoderLayers (dropout = identity / eval mode).
    for l in range(N_LAYERS):
        # ---- self-attention (fused QKV projection: one matmul) ----
        qkv = _mm(x, _wmat(w_ref, f"sa_in_{l}")) + _vrow(v_ref, f"sa_in_b_{l}")
        q = qkv[:, 0:d].reshape(bb, st, d)
        k = qkv[:, d:2 * d].reshape(bb, st, d)
        v = qkv[:, 2 * d:3 * d].reshape(bb, st, d)
        sa = _attend(q, k, v, scale).reshape(bb * st, d)
        sa = _mm(sa, _wmat(w_ref, f"sa_out_{l}")) + _vrow(v_ref, f"sa_out_b_{l}")
        x = _ln(x + sa, _vrow(v_ref, f"n1_w_{l}"), _vrow(v_ref, f"n1_b_{l}"))

        # ---- cross-attention over memory (fused KV projection) ----
        q = (_mm(x, _wmat(w_ref, f"ca_in_{l}", 0, d))
             + _vrow(v_ref, f"ca_in_b_{l}", 0, d)).reshape(bb, st, d)
        kv = (_mm(mem, _wmat(w_ref, f"ca_in_{l}", d, 3 * d))
              + _vrow(v_ref, f"ca_in_b_{l}", d, 3 * d))
        kk = kv[:, 0:d].reshape(bb, sm, d)
        vv = kv[:, d:2 * d].reshape(bb, sm, d)
        ca = _attend(q, kk, vv, scale).reshape(bb * st, d)
        ca = _mm(ca, _wmat(w_ref, f"ca_out_{l}")) + _vrow(v_ref, f"ca_out_b_{l}")
        x = _ln(x + ca, _vrow(v_ref, f"n2_w_{l}"), _vrow(v_ref, f"n2_b_{l}"))

        # ---- feed-forward (relu) ----
        h = jnp.maximum(
            _mm(x, _wmat(w_ref, f"ff1_{l}")) + _vrow(v_ref, f"ff1_b_{l}"), 0.0)
        ff = _mm(h, _wmat(w_ref, f"ff2_{l}")) + _vrow(v_ref, f"ff2_b_{l}")
        x = _ln(x + ff, _vrow(v_ref, f"n3_w_{l}"), _vrow(v_ref, f"n3_b_{l}"))

    # ---- head: logit difference p1 - p0 computed directly from the packed diff column ----
    dp = _mm(x, _wmat(w_ref, "head_diff")) + _vrow(v_ref, "head_b_diff")   # [bb*st, 1]

    # total_mask = softmax(p)[..., 1] == sigmoid(p1 - p0)
    mask = 1.0 / (1.0 + jnp.exp(-dp))

    # gumbel hard sample: argmax(logp + g) == 1  <=>  (p1-p0) + (g1-g0) > 0
    gd = gd_ref[...].reshape(bb * st, 1)
    rep = jnp.where(dp + gd > 0.0, 1.0, 0.0)

    # Single merged output: lane 0 = soft mask, lane 1 = hard sample.
    out_ref[...] = jnp.concatenate([mask, rep], axis=-1).reshape(bb, st, 2).astype(jnp.float32)


# --------------------------------- wrapper ------------------------------------

def mask_generator_forecasting(z_seq, src, w_slab, v_slab, gumbel_noise):
    """z_seq: [S_mem, B, D], src: [S_tgt, B, D], gumbel_noise: [S_tgt, B, 2].

    Returns (total_mask, total_mask_reparameterize), each [S_tgt, B]."""
    s_mem, b, d = z_seq.shape
    s_tgt = src.shape[0]
    assert d == D_Z

    # Tiny layout glue (batch-first for the kernel). The gumbel difference g1-g0 is
    # folded here (fuses with the transpose), so the kernel never slices a 2-wide lane.
    src_b = jnp.transpose(src, (1, 0, 2)).astype(jnp.float32)                # [B, S_tgt, D]
    mem_b = jnp.transpose(z_seq, (1, 0, 2)).astype(jnp.float32)              # [B, S_mem, D]
    gd_b = jnp.transpose(gumbel_noise[..., 1:2] - gumbel_noise[..., 0:1],
                         (1, 0, 2)).astype(jnp.float32)                      # [B, S_tgt, 1]

    # Batch blocking:
    #   b <= 2        : one block (trivial case, e.g. the test)
    #   3 <= b <= 16  : two blocks so the "parallel" axis can shard across v7x's 2 TCs
    #   b > 16        : blocks of 32 (amortizes per-step overhead; per-block VMEM is tiny)
    if b <= 2:
        b_block = b
    elif b <= 16:
        b_block = -(-b // 2)
    else:
        b_block = 32
    b_pad = -(-b // b_block) * b_block
    if b_pad != b:
        pad = ((0, b_pad - b), (0, 0), (0, 0))
        src_b = jnp.pad(src_b, pad)
        mem_b = jnp.pad(mem_b, pad)
        gd_b = jnp.pad(gd_b, pad)
    n_blocks = b_pad // b_block

    in_specs = [
        pl.BlockSpec((b_block, s_tgt, d), lambda i: (i, 0, 0)),
        pl.BlockSpec((b_block, s_mem, d), lambda i: (i, 0, 0)),
        pl.BlockSpec((b_block, s_tgt, 1), lambda i: (i, 0, 0)),
        pl.BlockSpec(w_slab.shape, lambda i: (0, 0)),   # packed matrix slab (grid-invariant)
        pl.BlockSpec(v_slab.shape, lambda i: (0, 0)),   # packed vector slab (grid-invariant)
    ]
    out_specs = pl.BlockSpec((b_block, s_tgt, 2), lambda i: (i, 0, 0))
    out_shape = jax.ShapeDtypeStruct((b_pad, s_tgt, 2), jnp.float32)

    out = pl.pallas_call(
        mask_gen_kernel,
        out_shape=out_shape,
        grid=(n_blocks,),
        in_specs=in_specs,
        out_specs=out_specs,
        compiler_params=pltpu.CompilerParams(
            dimension_semantics=("parallel",)),
    )(src_b, mem_b, gd_b, w_slab, v_slab)

    total_mask = jnp.transpose(out[:b, :, 0], (1, 0))   # [S_tgt, B]
    total_rep = jnp.transpose(out[:b, :, 1], (1, 0))    # [S_tgt, B]
    return total_mask, total_rep


# ------------------------- parameters & packing -------------------------------

def init_params(key, d_z=D_Z, d_ff=D_FF, n_layers=N_LAYERS):
    """PyTorch-convention parameters (weights [out, in], 1-D biases)."""
    def rnd(k, shape, scale):
        return (jax.random.normal(k, shape) * scale).astype(jnp.float32)

    keys = iter(jax.random.split(key, n_layers * 12 + 2))
    params = {}
    for l in range(n_layers):
        params[f"layer{l}"] = dict(
            sa_in_w=rnd(next(keys), (3 * d_z, d_z), 0.1),
            sa_in_b=rnd(next(keys), (3 * d_z,), 0.05),
            sa_out_w=rnd(next(keys), (d_z, d_z), 0.1),
            sa_out_b=rnd(next(keys), (d_z,), 0.05),
            ca_in_w=rnd(next(keys), (3 * d_z, d_z), 0.1),
            ca_in_b=rnd(next(keys), (3 * d_z,), 0.05),
            ca_out_w=rnd(next(keys), (d_z, d_z), 0.1),
            ca_out_b=rnd(next(keys), (d_z,), 0.05),
            ff1_w=rnd(next(keys), (d_ff, d_z), 0.1),
            ff1_b=rnd(next(keys), (d_ff,), 0.05),
            ff2_w=rnd(next(keys), (d_z, d_ff), 0.1),
            ff2_b=rnd(next(keys), (d_z,), 0.05),
            n1_w=jnp.ones((d_z,), jnp.float32), n1_b=jnp.zeros((d_z,), jnp.float32),
            n2_w=jnp.ones((d_z,), jnp.float32), n2_b=jnp.zeros((d_z,), jnp.float32),
            n3_w=jnp.ones((d_z,), jnp.float32), n3_b=jnp.zeros((d_z,), jnp.float32),
        )
    params["head_w"] = rnd(next(keys), (2, d_z), 0.1)   # time_prob_net.weight
    params["head_b"] = rnd(next(keys), (2,), 0.05)      # time_prob_net.bias
    return params


def pack_params(params):
    """Pack all weights (pre-transposed, QKV fused, head folded to a diff column)
    into two lane-padded f32 slabs."""
    w_slab = jnp.zeros((W_TOTAL, LANE), jnp.float32)
    v_slab = jnp.zeros((V_TOTAL, LANE), jnp.float32)

    def put_w(slab, name, mat_t):
        r, nr, nc = W_ROWS[name]
        return slab.at[r:r + nr, 0:nc].set(mat_t.astype(jnp.float32))

    def put_v(slab, name, vec):
        r, nc = V_ROWS[name]
        return slab.at[r, 0:nc].set(jnp.reshape(vec, (-1,)).astype(jnp.float32))

    for l in range(N_LAYERS):
        p = params[f"layer{l}"]
        w_slab = put_w(w_slab, f"sa_in_{l}", p["sa_in_w"].T)
        w_slab = put_w(w_slab, f"sa_out_{l}", p["sa_out_w"].T)
        w_slab = put_w(w_slab, f"ca_in_{l}", p["ca_in_w"].T)
        w_slab = put_w(w_slab, f"ca_out_{l}", p["ca_out_w"].T)
        w_slab = put_w(w_slab, f"ff1_{l}", p["ff1_w"].T)
        w_slab = put_w(w_slab, f"ff2_{l}", p["ff2_w"].T)
        v_slab = put_v(v_slab, f"sa_in_b_{l}", p["sa_in_b"])
        v_slab = put_v(v_slab, f"sa_out_b_{l}", p["sa_out_b"])
        v_slab = put_v(v_slab, f"ca_in_b_{l}", p["ca_in_b"])
        v_slab = put_v(v_slab, f"ca_out_b_{l}", p["ca_out_b"])
        v_slab = put_v(v_slab, f"ff1_b_{l}", p["ff1_b"])
        v_slab = put_v(v_slab, f"ff2_b_{l}", p["ff2_b"])
        for n in ("n1", "n2", "n3"):
            v_slab = put_v(v_slab, f"{n}_w_{l}", p[f"{n}_w"])
            v_slab = put_v(v_slab, f"{n}_b_{l}", p[f"{n}_b"])
    head_diff = (params["head_w"][1] - params["head_w"][0]).reshape(D_Z, 1)
    w_slab = put_w(w_slab, "head_diff", head_diff)
    v_slab = put_v(v_slab, "head_b_diff", params["head_b"][1:2] - params["head_b"][0:1])
    return w_slab, v_slab


# ------------------------------ pure-JAX reference ----------------------------

def _reference_forward(z_seq, src, params, gumbel_noise):
    x = jnp.transpose(src, (1, 0, 2)).astype(jnp.float32)
    mem = jnp.transpose(z_seq, (1, 0, 2)).astype(jnp.float32)
    g = jnp.transpose(gumbel_noise, (1, 0, 2)).astype(jnp.float32)
    d = x.shape[-1]

    def ln(t, w, b):
        mu = jnp.mean(t, -1, keepdims=True)
        var = jnp.mean((t - mu) ** 2, -1, keepdims=True)
        return (t - mu) / jnp.sqrt(var + LN_EPS) * w + b

    def mha(q_in, kv_in, w_in, b_in, w_out, b_out):
        q = jnp.einsum('bsd,ed->bse', q_in, w_in[:d]) + b_in[:d]
        k = jnp.einsum('bsd,ed->bse', kv_in, w_in[d:2 * d]) + b_in[d:2 * d]
        v = jnp.einsum('bsd,ed->bse', kv_in, w_in[2 * d:]) + b_in[2 * d:]
        s = jnp.einsum('bqe,bke->bqk', q, k) / jnp.sqrt(d)
        a = jax.nn.softmax(s, axis=-1)
        o = jnp.einsum('bqk,bke->bqe', a, v)
        return jnp.einsum('bqe,fe->bqf', o, w_out) + b_out

    for l in range(N_LAYERS):
        p = params[f"layer{l}"]
        x = ln(x + mha(x, x, p["sa_in_w"], p["sa_in_b"], p["sa_out_w"], p["sa_out_b"]),
               p["n1_w"], p["n1_b"])
        x = ln(x + mha(x, mem, p["ca_in_w"], p["ca_in_b"], p["ca_out_w"], p["ca_out_b"]),
               p["n2_w"], p["n2_b"])
        h = jax.nn.relu(jnp.einsum('bsd,fd->bsf', x, p["ff1_w"]) + p["ff1_b"])
        ff = jnp.einsum('bsf,df->bsd', h, p["ff2_w"]) + p["ff2_b"]
        x = ln(x + ff, p["n3_w"], p["n3_b"])

    logits = jnp.einsum('bsd,od->bso', x, params["head_w"]) + params["head_b"]
    total_mask = jax.nn.softmax(logits, axis=-1)[..., 1]
    y = jax.nn.log_softmax(logits, axis=-1) + g
    rep = (y[..., 1] > y[..., 0]).astype(jnp.float32)
    margin = y[..., 1] - y[..., 0]
    return total_mask.T, rep.T, margin.T


# ------------------------------------ main -------------------------------------

if __name__ == "__main__":
    key = jax.random.PRNGKey(0)
    k_param, k_z, k_src, k_gum = jax.random.split(key, 4)

    B, S_TGT, S_MEM = 2, 8, 12
    params = init_params(k_param)
    w_slab, v_slab = pack_params(params)   # one-time packing into 2 slabs

    z_seq = jax.random.normal(k_z, (S_MEM, B, D_Z), dtype=jnp.float32)
    src = jax.random.normal(k_src, (S_TGT, B, D_Z), dtype=jnp.float32)

    # Deterministic Gumbel(0,1) noise for the gumbel_softmax reparameterization.
    u = jax.random.uniform(k_gum, (S_TGT, B, 2), minval=1e-6, maxval=1.0)
    gumbel_noise = -jnp.log(-jnp.log(u))

    fwd = jax.jit(mask_generator_forecasting)
    total_mask, total_rep = fwd(z_seq, src, w_slab, v_slab, gumbel_noise)
    jax.block_until_ready((total_mask, total_rep))

    # Shape / range checks + pure-JAX reference comparison.
    assert total_mask.shape == (S_TGT, B)
    assert total_rep.shape == (S_TGT, B)
    assert bool(jnp.all((total_mask >= 0.0) & (total_mask <= 1.0)))
    assert bool(jnp.all((total_rep == 0.0) | (total_rep == 1.0)))

    ref_mask, ref_rep, ref_margin = _reference_forward(z_seq, src, params, gumbel_noise)
    # Tolerance widened slightly vs. the exact-divide version since the attention
    # softmax now uses the EUP approximate reciprocal.
    assert bool(jnp.allclose(total_mask, ref_mask, atol=2e-3, rtol=2e-3))
    # Hard sample must match except where the gumbel-argmax margin is ~0 (numerical tie).
    rep_ok = (total_rep == ref_rep) | (jnp.abs(ref_margin) < 5e-3)
    assert bool(jnp.all(rep_ok))

    print("KERNEL_OK")
</pallas_src>

<mosaic_0001>
module attributes {stable_mosaic.version = 11 : i64} {
  func.func @mask_gen_kernel(%arg0: i32, %arg1: memref<2x8x16xf32, #tpu.memory_space<vmem>>, %arg2: memref<2x12x16xf32, #tpu.memory_space<vmem>>, %arg3: memref<2x8x1xf32, #tpu.memory_space<vmem>>, %arg4: memref<240x128xf32, #tpu.memory_space<vmem>>, %arg5: memref<32x128xf32, #tpu.memory_space<vmem>>, %arg6: memref<2x8x2xf32, #tpu.memory_space<vmem>>) attributes {dimension_semantics = [#tpu.dimension_semantics<parallel>], iteration_bounds = array<i64: 1>, scalar_prefetch = 0 : i64, scratch_operands = 0 : i64, tpu.core_type = #tpu.core_type<tc>, window_params = [{transform_indices = @transform_0, window_bounds = array<i64: 2, 8, 16>}, {transform_indices = @transform_1, window_bounds = array<i64: 2, 12, 16>}, {transform_indices = @transform_2, window_bounds = array<i64: 2, 8, 1>}, {pipeline_mode = #tpu.pipeline_mode<synchronous>, transform_indices = @transform_3, window_bounds = array<i64: 240, 128>}, {pipeline_mode = #tpu.pipeline_mode<synchronous>, transform_indices = @transform_4, window_bounds = array<i64: 32, 128>}, {transform_indices = @transform_5, window_bounds = array<i64: 2, 8, 2>}]} {
    %c0 = arith.constant 0 : index
    %c0_0 = arith.constant 0 : index
    %c0_1 = arith.constant 0 : index
    %0 = vector.load %arg1[%c0, %c0_0, %c0_1] : memref<2x8x16xf32, #tpu.memory_space<vmem>>, vector<2x8x16xf32>
    %1 = vector.shape_cast %0 : vector<2x8x16xf32> to vector<16x16xf32>
    %c0_2 = arith.constant 0 : index
    %c0_3 = arith.constant 0 : index
    %c0_4 = arith.constant 0 : index
    %2 = vector.load %arg2[%c0_2, %c0_3, %c0_4] : memref<2x12x16xf32, #tpu.memory_space<vmem>>, vector<2x12x16xf32>
    %3 = vector.shape_cast %2 : vector<2x12x16xf32> to vector<24x16xf32>
    %c0_5 = arith.constant 0 : index
    %c0_6 = arith.constant 0 : index
    %4 = vector.load %arg4[%c0_5, %c0_6] : memref<240x128xf32, #tpu.memory_space<vmem>>, vector<16x48xf32>
    %cst = arith.constant dense<0.000000e+00> : vector<16x48xf32>
    %5 = tpu.matmul %1, %4, %cst {dimension_numbers = #tpu.dot_dimension_numbers<[1], [0], [0], [1], [0, 0, 1, 1], [], []>} : vector<16x16xf32>, vector<16x48xf32>, vector<16x48xf32> -> vector<16x48xf32>
    %c0_7 = arith.constant 0 : index
    %c0_8 = arith.constant 0 : index
    %6 = vector.load %arg5[%c0_7, %c0_8] : memref<32x128xf32, #tpu.memory_space<vmem>>, vector<1x48xf32>
    %7 = vector.broadcast %6 : vector<1x48xf32> to vector<16x48xf32>
    %8 = arith.addf %5, %7 : vector<16x48xf32>
    %9 = vector.extract_strided_slice %8 {offsets = [0, 0], sizes = [16, 16], strides = [1, 1]} : vector<16x48xf32> to vector<16x16xf32>
    %10 = vector.shape_cast %9 : vector<16x16xf32> to vector<2x8x16xf32>
    %11 = vector.extract_strided_slice %8 {offsets = [0, 16], sizes = [16, 16], strides = [1, 1]} : vector<16x48xf32> to vector<16x16xf32>
    %12 = vector.shape_cast %11 : vector<16x16xf32> to vector<2x8x16xf32>
    %13 = vector.extract_strided_slice %8 {offsets = [0, 32], sizes = [16, 16], strides = [1, 1]} : vector<16x48xf32> to vector<16x16xf32>
    %14 = vector.shape_cast %13 : vector<16x16xf32> to vector<2x8x16xf32>
    %cst_9 = arith.constant dense<0.000000e+00> : vector<2x8x8xf32>
    %15 = tpu.matmul %10, %12, %cst_9 {dimension_numbers = #tpu.dot_dimension_numbers<[2], [2], [1], [1], [0, 0, 0, 1, 1, 1], [0], [0]>} : vector<2x8x16xf32>, vector<2x8x16xf32>, vector<2x8x8xf32> -> vector<2x8x8xf32>
    %cst_10 = arith.constant 2.500000e-01 : f32
    %16 = vector.broadcast %cst_10 : f32 to vector<2x8x8xf32>
    %17 = arith.mulf %15, %16 : vector<2x8x8xf32>
    %cst_11 = arith.constant dense<0xFF800000> : vector<2x8xf32>
    %18 = vector.multi_reduction <maximumf>, %17, %cst_11 [2] : vector<2x8x8xf32> to vector<2x8xf32>
    %19 = vector.shape_cast %18 : vector<2x8xf32> to vector<2x8x1xf32>
    %20 = vector.broadcast %19 : vector<2x8x1xf32> to vector<2x8x8xf32>
    %21 = arith.subf %17, %20 : vector<2x8x8xf32>
    %22 = math.exp %21 : vector<2x8x8xf32>
    %cst_12 = arith.constant dense<0.000000e+00> : vector<2x8xf32>
    %23 = vector.multi_reduction <add>, %22, %cst_12 [2] : vector<2x8x8xf32> to vector<2x8xf32>
    %24 = vector.shape_cast %23 : vector<2x8xf32> to vector<2x8x1xf32>
    %25 = tpu.reciprocal %24 {approx = true} : vector<2x8x1xf32> -> vector<2x8x1xf32>
    %26 = vector.broadcast %25 : vector<2x8x1xf32> to vector<2x8x8xf32>
    %27 = arith.mulf %22, %26 : vector<2x8x8xf32>
    %cst_13 = arith.constant dense<0.000000e+00> : vector<2x8x16xf32>
    %28 = tpu.matmul %27, %14, %cst_13 {dimension_numbers = #tpu.dot_dimension_numbers<[2], [1], [1], [2], [0, 0, 0, 1, 1, 2], [0], [0]>} : vector<2x8x8xf32>, vector<2x8x16xf32>, vector<2x8x16xf32> -> vector<2x8x16xf32>
    %29 = vector.shape_cast %28 : vector<2x8x16xf32> to vector<16x16xf32>
    %c16 = arith.constant 16 : index
    %c0_14 = arith.constant 0 : index
    %30 = vector.load %arg4[%c16, %c0_14] : memref<240x128xf32, #tpu.memory_space<vmem>>, vector<16x16xf32>
    %cst_15 = arith.constant dense<0.000000e+00> : vector<16x16xf32>
    %31 = tpu.matmul %29, %30, %cst_15 {dimension_numbers = #tpu.dot_dimension_numbers<[1], [0], [0], [1], [0, 0, 1, 1], [], []>} : vector<16x16xf32>, vector<16x16xf32>, vector<16x16xf32> -> vector<16x16xf32>
    %c1 = arith.constant 1 : index
    %c0_16 = arith.constant 0 : index
    %32 = vector.load %arg5[%c1, %c0_16] : memref<32x128xf32, #tpu.memory_space<vmem>>, vector<1x16xf32>
    %33 = vector.broadcast %32 : vector<1x16xf32> to vector<16x16xf32>
    %34 = arith.addf %31, %33 : vector<16x16xf32>
    %35 = arith.addf %1, %34 : vector<16x16xf32>
    %c6 = arith.constant 6 : index
    %c0_17 = arith.constant 0 : index
    %36 = vector.load %arg5[%c6, %c0_17] : memref<32x128xf32, #tpu.memory_space<vmem>>, vector<1x16xf32>
    %c7 = arith.constant 7 : index
    %c0_18 = arith.constant 0 : index
    %37 = vector.load %arg5[%c7, %c0_18] : memref<32x128xf32, #tpu.memory_space<vmem>>, vector<1x16xf32>
    %cst_19 = arith.constant dense<0.000000e+00> : vector<16xf32>
    %38 = vector.multi_reduction <add>, %35, %cst_19 [1] : vector<16x16xf32> to vector<16xf32>
    %39 = vector.shape_cast %38 : vector<16xf32> to vector<16x1xf32>
    %cst_20 = arith.constant 1.600000e+01 : f32
    %40 = vector.broadcast %cst_20 : f32 to vector<16x1xf32>
    %41 = arith.divf %39, %40 : vector<16x1xf32>
    %42 = vector.broadcast %41 : vector<16x1xf32> to vector<16x16xf32>
    %43 = arith.subf %35, %42 : vector<16x16xf32>
    %44 = arith.mulf %43, %43 : vector<16x16xf32>
    %cst_21 = arith.constant dense<0.000000e+00> : vector<16xf32>
    %45 = vector.multi_reduction <add>, %44, %cst_21 [1] : vector<16x16xf32> to vector<16xf32>
    %46 = vector.shape_cast %45 : vector<16xf32> to vector<16x1xf32>
    %cst_22 = arith.constant 1.600000e+01 : f32
    %47 = vector.broadcast %cst_22 : f32 to vector<16x1xf32>
    %48 = arith.divf %46, %47 : vector<16x1xf32>
    %cst_23 = arith.constant 9.99999974E-6 : f32
    %49 = vector.broadcast %cst_23 : f32 to vector<16x1xf32>
    %50 = arith.addf %48, %49 : vector<16x1xf32>
    %51 = math.rsqrt %50 : vector<16x1xf32>
    %52 = vector.broadcast %51 : vector<16x1xf32> to vector<16x16xf32>
    %53 = arith.mulf %43, %52 : vector<16x16xf32>
    %54 = vector.broadcast %36 : vector<1x16xf32> to vector<16x16xf32>
    %55 = arith.mulf %53, %54 : vector<16x16xf32>
    %56 = vector.broadcast %37 : vector<1x16xf32> to vector<16x16xf32>
    %57 = arith.addf %55, %56 : vector<16x16xf32>
    %c32 = arith.constant 32 : index
    %c0_24 = arith.constant 0 : index
    %58 = vector.load %arg4[%c32, %c0_24] : memref<240x128xf32, #tpu.memory_space<vmem>>, vector<16x16xf32>
    %cst_25 = arith.constant dense<0.000000e+00> : vector<16x16xf32>
    %59 = tpu.matmul %57, %58, %cst_25 {dimension_numbers = #tpu.dot_dimension_numbers<[1], [0], [0], [1], [0, 0, 1, 1], [], []>} : vector<16x16xf32>, vector<16x16xf32>, vector<16x16xf32> -> vector<16x16xf32>
    %c2 = arith.constant 2 : index
    %c0_26 = arith.constant 0 : index
    %60 = vector.load %arg5[%c2, %c0_26] : memref<32x128xf32, #tpu.memory_space<vmem>>, vector<1x16xf32>
    %61 = vector.broadcast %60 : vector<1x16xf32> to vector<16x16xf32>
    %62 = arith.addf %59, %61 : vector<16x16xf32>
    %63 = vector.shape_cast %62 : vector<16x16xf32> to vector<2x8x16xf32>
    %c32_27 = arith.constant 32 : index
    %c16_28 = arith.constant 16 : index
    %64 = vector.load %arg4[%c32_27, %c16_28] : memref<240x128xf32, #tpu.memory_space<vmem>>, vector<16x32xf32>
    %cst_29 = arith.constant dense<0.000000e+00> : vector<24x32xf32>
    %65 = tpu.matmul %3, %64, %cst_29 {dimension_numbers = #tpu.dot_dimension_numbers<[1], [0], [0], [1], [0, 0, 1, 1], [], []>} : vector<24x16xf32>, vector<16x32xf32>, vector<24x32xf32> -> vector<24x32xf32>
    %c2_30 = arith.constant 2 : index
    %c16_31 = arith.constant 16 : index
    %66 = vector.load %arg5[%c2_30, %c16_31] : memref<32x128xf32, #tpu.memory_space<vmem>>, vector<1x32xf32>
    %67 = vector.broadcast %66 : vector<1x32xf32> to vector<24x32xf32>
    %68 = arith.addf %65, %67 : vector<24x32xf32>
    %69 = vector.extract_strided_slice %68 {offsets = [0, 0], sizes = [24, 16], strides = [1, 1]} : vector<24x32xf32> to vector<24x16xf32>
    %70 = vector.shape_cast %69 : vector<24x16xf32> to vector<2x12x16xf32>
    %71 = vector.extract_strided_slice %68 {offsets = [0, 16], sizes = [24, 16], strides = [1, 1]} : vector<24x32xf32> to vector<24x16xf32>
    %72 = vector.shape_cast %71 : vector<24x16xf32> to vector<2x12x16xf32>
    %cst_32 = arith.constant dense<0.000000e+00> : vector<2x8x12xf32>
    %73 = tpu.matmul %63, %70, %cst_32 {dimension_numbers = #tpu.dot_dimension_numbers<[2], [2], [1], [1], [0, 0, 0, 1, 1, 1], [0], [0]>} : vector<2x8x16xf32>, vector<2x12x16xf32>, vector<2x8x12xf32> -> vector<2x8x12xf32>
    %cst_33 = arith.constant 2.500000e-01 : f32
    %74 = vector.broadcast %cst_33 : f32 to vector<2x8x12xf32>
    %75 = arith.mulf %73, %74 : vector<2x8x12xf32>
    %cst_34 = arith.constant dense<0xFF800000> : vector<2x8xf32>
    %76 = vector.multi_reduction <maximumf>, %75, %cst_34 [2] : vector<2x8x12xf32> to vector<2x8xf32>
    %77 = vector.shape_cast %76 : vector<2x8xf32> to vector<2x8x1xf32>
    %78 = vector.broadcast %77 : vector<2x8x1xf32> to vector<2x8x12xf32>
    %79 = arith.subf %75, %78 : vector<2x8x12xf32>
    %80 = math.exp %79 : vector<2x8x12xf32>
    %cst_35 = arith.constant dense<0.000000e+00> : vector<2x8xf32>
    %81 = vector.multi_reduction <add>, %80, %cst_35 [2] : vector<2x8x12xf32> to vector<2x8xf32>
    %82 = vector.shape_cast %81 : vector<2x8xf32> to vector<2x8x1xf32>
    %83 = tpu.reciprocal %82 {approx = true} : vector<2x8x1xf32> -> vector<2x8x1xf32>
    %84 = vector.broadcast %83 : vector<2x8x1xf32> to vector<2x8x12xf32>
    %85 = arith.mulf %80, %84 : vector<2x8x12xf32>
    %cst_36 = arith.constant dense<0.000000e+00> : vector<2x8x16xf32>
    %86 = tpu.matmul %85, %72, %cst_36 {dimension_numbers = #tpu.dot_dimension_numbers<[2], [1], [1], [2], [0, 0, 0, 1, 1, 2], [0], [0]>} : vector<2x8x12xf32>, vector<2x12x16xf32>, vector<2x8x16xf32> -> vector<2x8x16xf32>
    %87 = vector.shape_cast %86 : vector<2x8x16xf32> to vector<16x16xf32>
    %c48 = arith.constant 48 : index
    %c0_37 = arith.constant 0 : index
    %88 = vector.load %arg4[%c48, %c0_37] : memref<240x128xf32, #tpu.memory_space<vmem>>, vector<16x16xf32>
    %cst_38 = arith.constant dense<0.000000e+00> : vector<16x16xf32>
    %89 = tpu.matmul %87, %88, %cst_38 {dimension_numbers = #tpu.dot_dimension_numbers<[1], [0], [0], [1], [0, 0, 1, 1], [], []>} : vector<16x16xf32>, vector<16x16xf32>, vector<16x16xf32> -> vector<16x16xf32>
    %c3 = arith.constant 3 : index
    %c0_39 = arith.constant 0 : index
    %90 = vector.load %arg5[%c3, %c0_39] : memref<32x128xf32, #tpu.memory_space<vmem>>, vector<1x16xf32>
    %91 = vector.broadcast %90 : vector<1x16xf32> to vector<16x16xf32>
    %92 = arith.addf %89, %91 : vector<16x16xf32>
    %93 = arith.addf %57, %92 : vector<16x16xf32>
    %c8 = arith.constant 8 : index
    %c0_40 = arith.constant 0 : index
    %94 = vector.load %arg5[%c8, %c0_40] : memref<32x128xf32, #tpu.memory_space<vmem>>, vector<1x16xf32>
    %c9 = arith.constant 9 : index
    %c0_41 = arith.constant 0 : index
    %95 = vector.load %arg5[%c9, %c0_41] : memref<32x128xf32, #tpu.memory_space<vmem>>, vector<1x16xf32>
    %cst_42 = arith.constant dense<0.000000e+00> : vector<16xf32>
    %96 = vector.multi_reduction <add>, %93, %cst_42 [1] : vector<16x16xf32> to vector<16xf32>
    %97 = vector.shape_cast %96 : vector<16xf32> to vector<16x1xf32>
    %cst_43 = arith.constant 1.600000e+01 : f32
    %98 = vector.broadcast %cst_43 : f32 to vector<16x1xf32>
    %99 = arith.divf %97, %98 : vector<16x1xf32>
    %100 = vector.broadcast %99 : vector<16x1xf32> to vector<16x16xf32>
    %101 = arith.subf %93, %100 : vector<16x16xf32>
    %102 = arith.mulf %101, %101 : vector<16x16xf32>
    %cst_44 = arith.constant dense<0.000000e+00> : vector<16xf32>
    %103 = vector.multi_reduction <add>, %102, %cst_44 [1] : vector<16x16xf32> to vector<16xf32>
    %104 = vector.shape_cast %103 : vector<16xf32> to vector<16x1xf32>
    %cst_45 = arith.constant 1.600000e+01 : f32
    %105 = vector.broadcast %cst_45 : f32 to vector<16x1xf32>
    %106 = arith.divf %104, %105 : vector<16x1xf32>
    %cst_46 = arith.constant 9.99999974E-6 : f32
    %107 = vector.broadcast %cst_46 : f32 to vector<16x1xf32>
    %108 = arith.addf %106, %107 : vector<16x1xf32>
    %109 = math.rsqrt %108 : vector<16x1xf32>
    %110 = vector.broadcast %109 : vector<16x1xf32> to vector<16x16xf32>
    %111 = arith.mulf %101, %110 : vector<16x16xf32>
    %112 = vector.broadcast %94 : vector<1x16xf32> to vector<16x16xf32>
    %113 = arith.mulf %111, %112 : vector<16x16xf32>
    %114 = vector.broadcast %95 : vector<1x16xf32> to vector<16x16xf32>
    %115 = arith.addf %113, %114 : vector<16x16xf32>
    %c64 = arith.constant 64 : index
    %c0_47 = arith.constant 0 : index
    %116 = vector.load %arg4[%c64, %c0_47] : memref<240x128xf32, #tpu.memory_space<vmem>>, vector<16x32xf32>
    %cst_48 = arith.constant dense<0.000000e+00> : vector<16x32xf32>
    %117 = tpu.matmul %115, %116, %cst_48 {dimension_numbers = #tpu.dot_dimension_numbers<[1], [0], [0], [1], [0, 0, 1, 1], [], []>} : vector<16x16xf32>, vector<16x32xf32>, vector<16x32xf32> -> vector<16x32xf32>
    %c4 = arith.constant 4 : index
    %c0_49 = arith.constant 0 : index
    %118 = vector.load %arg5[%c4, %c0_49] : memref<32x128xf32, #tpu.memory_space<vmem>>, vector<1x32xf32>
    %119 = vector.broadcast %118 : vector<1x32xf32> to vector<16x32xf32>
    %120 = arith.addf %117, %119 : vector<16x32xf32>
    %cst_50 = arith.constant 0.000000e+00 : f32
    %121 = vector.broadcast %cst_50 : f32 to vector<16x32xf32>
    %122 = arith.maximumf %120, %121 : vector<16x32xf32>
    %c80 = arith.constant 80 : index
    %c0_51 = arith.constant 0 : index
    %123 = vector.load %arg4[%c80, %c0_51] : memref<240x128xf32, #tpu.memory_space<vmem>>, vector<32x16xf32>
    %cst_52 = arith.constant dense<0.000000e+00> : vector<16x16xf32>
    %124 = tpu.matmul %122, %123, %cst_52 {dimension_numbers = #tpu.dot_dimension_numbers<[1], [0], [0], [1], [0, 0, 1, 1], [], []>} : vector<16x32xf32>, vector<32x16xf32>, vector<16x16xf32> -> vector<16x16xf32>
    %c5 = arith.constant 5 : index
    %c0_53 = arith.constant 0 : index
    %125 = vector.load %arg5[%c5, %c0_53] : memref<32x128xf32, #tpu.memory_space<vmem>>, vector<1x16xf32>
    %126 = vector.broadcast %125 : vector<1x16xf32> to vector<16x16xf32>
    %127 = arith.addf %124, %126 : vector<16x16xf32>
    %128 = arith.addf %115, %127 : vector<16x16xf32>
    %c10 = arith.constant 10 : index
    %c0_54 = arith.constant 0 : index
    %129 = vector.load %arg5[%c10, %c0_54] : memref<32x128xf32, #tpu.memory_space<vmem>>, vector<1x16xf32>
    %c11 = arith.constant 11 : index
    %c0_55 = arith.constant 0 : index
    %130 = vector.load %arg5[%c11, %c0_55] : memref<32x128xf32, #tpu.memory_space<vmem>>, vector<1x16xf32>
    %cst_56 = arith.constant dense<0.000000e+00> : vector<16xf32>
    %131 = vector.multi_reduction <add>, %128, %cst_56 [1] : vector<16x16xf32> to vector<16xf32>
    %132 = vector.shape_cast %131 : vector<16xf32> to vector<16x1xf32>
    %cst_57 = arith.constant 1.600000e+01 : f32
    %133 = vector.broadcast %cst_57 : f32 to vector<16x1xf32>
    %134 = arith.divf %132, %133 : vector<16x1xf32>
    %135 = vector.broadcast %134 : vector<16x1xf32> to vector<16x16xf32>
    %136 = arith.subf %128, %135 : vector<16x16xf32>
    %137 = arith.mulf %136, %136 : vector<16x16xf32>
    %cst_58 = arith.constant dense<0.000000e+00> : vector<16xf32>
    %138 = vector.multi_reduction <add>, %137, %cst_58 [1] : vector<16x16xf32> to vector<16xf32>
    %139 = vector.shape_cast %138 : vector<16xf32> to vector<16x1xf32>
    %cst_59 = arith.constant 1.600000e+01 : f32
    %140 = vector.broadcast %cst_59 : f32 to vector<16x1xf32>
    %141 = arith.divf %139, %140 : vector<16x1xf32>
    %cst_60 = arith.constant 9.99999974E-6 : f32
    %142 = vector.broadcast %cst_60 : f32 to vector<16x1xf32>
    %143 = arith.addf %141, %142 : vector<16x1xf32>
    %144 = math.rsqrt %143 : vector<16x1xf32>
    %145 = vector.broadcast %144 : vector<16x1xf32> to vector<16x16xf32>
    %146 = arith.mulf %136, %145 : vector<16x16xf32>
    %147 = vector.broadcast %129 : vector<1x16xf32> to vector<16x16xf32>
    %148 = arith.mulf %146, %147 : vector<16x16xf32>
    %149 = vector.broadcast %130 : vector<1x16xf32> to vector<16x16xf32>
    %150 = arith.addf %148, %149 : vector<16x16xf32>
    %c112 = arith.constant 112 : index
    %c0_61 = arith.constant 0 : index
    %151 = vector.load %arg4[%c112, %c0_61] : memref<240x128xf32, #tpu.memory_space<vmem>>, vector<16x48xf32>
    %cst_62 = arith.constant dense<0.000000e+00> : vector<16x48xf32>
    %152 = tpu.matmul %150, %151, %cst_62 {dimension_numbers = #tpu.dot_dimension_numbers<[1], [0], [0], [1], [0, 0, 1, 1], [], []>} : vector<16x16xf32>, vector<16x48xf32>, vector<16x48xf32> -> vector<16x48xf32>
    %c12 = arith.constant 12 : index
    %c0_63 = arith.constant 0 : index
    %153 = vector.load %arg5[%c12, %c0_63] : memref<32x128xf32, #tpu.memory_space<vmem>>, vector<1x48xf32>
    %154 = vector.broadcast %153 : vector<1x48xf32> to vector<16x48xf32>
    %155 = arith.addf %152, %154 : vector<16x48xf32>
    %156 = vector.extract_strided_slice %155 {offsets = [0, 0], sizes = [16, 16], strides = [1, 1]} : vector<16x48xf32> to vector<16x16xf32>
    %157 = vector.shape_cast %156 : vector<16x16xf32> to vector<2x8x16xf32>
    %158 = vector.extract_strided_slice %155 {offsets = [0, 16], sizes = [16, 16], strides = [1, 1]} : vector<16x48xf32> to vector<16x16xf32>
    %159 = vector.shape_cast %158 : vector<16x16xf32> to vector<2x8x16xf32>
    %160 = vector.extract_strided_slice %155 {offsets = [0, 32], sizes = [16, 16], strides = [1, 1]} : vector<16x48xf32> to vector<16x16xf32>
    %161 = vector.shape_cast %160 : vector<16x16xf32> to vector<2x8x16xf32>
    %cst_64 = arith.constant dense<0.000000e+00> : vector<2x8x8xf32>
    %162 = tpu.matmul %157, %159, %cst_64 {dimension_numbers = #tpu.dot_dimension_numbers<[2], [2], [1], [1], [0, 0, 0, 1, 1, 1], [0], [0]>} : vector<2x8x16xf32>, vector<2x8x16xf32>, vector<2x8x8xf32> -> vector<2x8x8xf32>
    %cst_65 = arith.constant 2.500000e-01 : f32
    %163 = vector.broadcast %cst_65 : f32 to vector<2x8x8xf32>
    %164 = arith.mulf %162, %163 : vector<2x8x8xf32>
    %cst_66 = arith.constant dense<0xFF800000> : vector<2x8xf32>
    %165 = vector.multi_reduction <maximumf>, %164, %cst_66 [2] : vector<2x8x8xf32> to vector<2x8xf32>
    %166 = vector.shape_cast %165 : vector<2x8xf32> to vector<2x8x1xf32>
    %167 = vector.broadcast %166 : vector<2x8x1xf32> to vector<2x8x8xf32>
    %168 = arith.subf %164, %167 : vector<2x8x8xf32>
    %169 = math.exp %168 : vector<2x8x8xf32>
    %cst_67 = arith.constant dense<0.000000e+00> : vector<2x8xf32>
    %170 = vector.multi_reduction <add>, %169, %cst_67 [2] : vector<2x8x8xf32> to vector<2x8xf32>
    %171 = vector.shape_cast %170 : vector<2x8xf32> to vector<2x8x1xf32>
    %172 = tpu.reciprocal %171 {approx = true} : vector<2x8x1xf32> -> vector<2x8x1xf32>
    %173 = vector.broadcast %172 : vector<2x8x1xf32> to vector<2x8x8xf32>
    %174 = arith.mulf %169, %173 : vector<2x8x8xf32>
    %cst_68 = arith.constant dense<0.000000e+00> : vector<2x8x16xf32>
    %175 = tpu.matmul %174, %161, %cst_68 {dimension_numbers = #tpu.dot_dimension_numbers<[2], [1], [1], [2], [0, 0, 0, 1, 1, 2], [0], [0]>} : vector<2x8x8xf32>, vector<2x8x16xf32>, vector<2x8x16xf32> -> vector<2x8x16xf32>
    %176 = vector.shape_cast %175 : vector<2x8x16xf32> to vector<16x16xf32>
    %c128 = arith.constant 128 : index
    %c0_69 = arith.constant 0 : index
    %177 = vector.load %arg4[%c128, %c0_69] : memref<240x128xf32, #tpu.memory_space<vmem>>, vector<16x16xf32>
    %cst_70 = arith.constant dense<0.000000e+00> : vector<16x16xf32>
    %178 = tpu.matmul %176, %177, %cst_70 {dimension_numbers = #tpu.dot_dimension_numbers<[1], [0], [0], [1], [0, 0, 1, 1], [], []>} : vector<16x16xf32>, vector<16x16xf32>, vector<16x16xf32> -> vector<16x16xf32>
    %c13 = arith.constant 13 : index
    %c0_71 = arith.constant 0 : index
    %179 = vector.load %arg5[%c13, %c0_71] : memref<32x128xf32, #tpu.memory_space<vmem>>, vector<1x16xf32>
    %180 = vector.broadcast %179 : vector<1x16xf32> to vector<16x16xf32>
    %181 = arith.addf %178, %180 : vector<16x16xf32>
    %182 = arith.addf %150, %181 : vector<16x16xf32>
    %c18 = arith.constant 18 : index
    %c0_72 = arith.constant 0 : index
    %183 = vector.load %arg5[%c18, %c0_72] : memref<32x128xf32, #tpu.memory_space<vmem>>, vector<1x16xf32>
    %c19 = arith.constant 19 : index
    %c0_73 = arith.constant 0 : index
    %184 = vector.load %arg5[%c19, %c0_73] : memref<32x128xf32, #tpu.memory_space<vmem>>, vector<1x16xf32>
    %cst_74 = arith.constant dense<0.000000e+00> : vector<16xf32>
    %185 = vector.multi_reduction <add>, %182, %cst_74 [1] : vector<16x16xf32> to vector<16xf32>
    %186 = vector.shape_cast %185 : vector<16xf32> to vector<16x1xf32>
    %cst_75 = arith.constant 1.600000e+01 : f32
    %187 = vector.broadcast %cst_75 : f32 to vector<16x1xf32>
    %188 = arith.divf %186, %187 : vector<16x1xf32>
    %189 = vector.broadcast %188 : vector<16x1xf32> to vector<16x16xf32>
    %190 = arith.subf %182, %189 : vector<16x16xf32>
    %191 = arith.mulf %190, %190 : vector<16x16xf32>
    %cst_76 = arith.constant dense<0.000000e+00> : vector<16xf32>
    %192 = vector.multi_reduction <add>, %191, %cst_76 [1] : vector<16x16xf32> to vector<16xf32>
    %193 = vector.shape_cast %192 : vector<16xf32> to vector<16x1xf32>
    %cst_77 = arith.constant 1.600000e+01 : f32
    %194 = vector.broadcast %cst_77 : f32 to vector<16x1xf32>
    %195 = arith.divf %193, %194 : vector<16x1xf32>
    %cst_78 = arith.constant 9.99999974E-6 : f32
    %196 = vector.broadcast %cst_78 : f32 to vector<16x1xf32>
    %197 = arith.addf %195, %196 : vector<16x1xf32>
    %198 = math.rsqrt %197 : vector<16x1xf32>
    %199 = vector.broadcast %198 : vector<16x1xf32> to vector<16x16xf32>
    %200 = arith.mulf %190, %199 : vector<16x16xf32>
    %201 = vector.broadcast %183 : vector<1x16xf32> to vector<16x16xf32>
    %202 = arith.mulf %200, %201 : vector<16x16xf32>
    %203 = vector.broadcast %184 : vector<1x16xf32> to vector<16x16xf32>
    %204 = arith.addf %202, %203 : vector<16x16xf32>
    %c144 = arith.constant 144 : index
    %c0_79 = arith.constant 0 : index
    %205 = vector.load %arg4[%c144, %c0_79] : memref<240x128xf32, #tpu.memory_space<vmem>>, vector<16x16xf32>
    %cst_80 = arith.constant dense<0.000000e+00> : vector<16x16xf32>
    %206 = tpu.matmul %204, %205, %cst_80 {dimension_numbers = #tpu.dot_dimension_numbers<[1], [0], [0], [1], [0, 0, 1, 1], [], []>} : vector<16x16xf32>, vector<16x16xf32>, vector<16x16xf32> -> vector<16x16xf32>
    %c14 = arith.constant 14 : index
    %c0_81 = arith.constant 0 : index
    %207 = vector.load %arg5[%c14, %c0_81] : memref<32x128xf32, #tpu.memory_space<vmem>>, vector<1x16xf32>
    %208 = vector.broadcast %207 : vector<1x16xf32> to vector<16x16xf32>
    %209 = arith.addf %206, %208 : vector<16x16xf32>
    %210 = vector.shape_cast %209 : vector<16x16xf32> to vector<2x8x16xf32>
    %c144_82 = arith.constant 144 : index
    %c16_83 = arith.constant 16 : index
    %211 = vector.load %arg4[%c144_82, %c16_83] : memref<240x128xf32, #tpu.memory_space<vmem>>, vector<16x32xf32>
    %cst_84 = arith.constant dense<0.000000e+00> : vector<24x32xf32>
    %212 = tpu.matmul %3, %211, %cst_84 {dimension_numbers = #tpu.dot_dimension_numbers<[1], [0], [0], [1], [0, 0, 1, 1], [], []>} : vector<24x16xf32>, vector<16x32xf32>, vector<24x32xf32> -> vector<24x32xf32>
    %c14_85 = arith.constant 14 : index
    %c16_86 = arith.constant 16 : index
    %213 = vector.load %arg5[%c14_85, %c16_86] : memref<32x128xf32, #tpu.memory_space<vmem>>, vector<1x32xf32>
    %214 = vector.broadcast %213 : vector<1x32xf32> to vector<24x32xf32>
    %215 = arith.addf %212, %214 : vector<24x32xf32>
    %216 = vector.extract_strided_slice %215 {offsets = [0, 0], sizes = [24, 16], strides = [1, 1]} : vector<24x32xf32> to vector<24x16xf32>
    %217 = vector.shape_cast %216 : vector<24x16xf32> to vector<2x12x16xf32>
    %218 = vector.extract_strided_slice %215 {offsets = [0, 16], sizes = [24, 16], strides = [1, 1]} : vector<24x32xf32> to vector<24x16xf32>
    %219 = vector.shape_cast %218 : vector<24x16xf32> to vector<2x12x16xf32>
    %cst_87 = arith.constant dense<0.000000e+00> : vector<2x8x12xf32>
    %220 = tpu.matmul %210, %217, %cst_87 {dimension_numbers = #tpu.dot_dimension_numbers<[2], [2], [1], [1], [0, 0, 0, 1, 1, 1], [0], [0]>} : vector<2x8x16xf32>, vector<2x12x16xf32>, vector<2x8x12xf32> -> vector<2x8x12xf32>
    %cst_88 = arith.constant 2.500000e-01 : f32
    %221 = vector.broadcast %cst_88 : f32 to vector<2x8x12xf32>
    %222 = arith.mulf %220, %221 : vector<2x8x12xf32>
    %cst_89 = arith.constant dense<0xFF800000> : vector<2x8xf32>
    %223 = vector.multi_reduction <maximumf>, %222, %cst_89 [2] : vector<2x8x12xf32> to vector<2x8xf32>
    %224 = vector.shape_cast %223 : vector<2x8xf32> to vector<2x8x1xf32>
    %225 = vector.broadcast %224 : vector<2x8x1xf32> to vector<2x8x12xf32>
    %226 = arith.subf %222, %225 : vector<2x8x12xf32>
    %227 = math.exp %226 : vector<2x8x12xf32>
    %cst_90 = arith.constant dense<0.000000e+00> : vector<2x8xf32>
    %228 = vector.multi_reduction <add>, %227, %cst_90 [2] : vector<2x8x12xf32> to vector<2x8xf32>
    %229 = vector.shape_cast %228 : vector<2x8xf32> to vector<2x8x1xf32>
    %230 = tpu.reciprocal %229 {approx = true} : vector<2x8x1xf32> -> vector<2x8x1xf32>
    %231 = vector.broadcast %230 : vector<2x8x1xf32> to vector<2x8x12xf32>
    %232 = arith.mulf %227, %231 : vector<2x8x12xf32>
    %cst_91 = arith.constant dense<0.000000e+00> : vector<2x8x16xf32>
    %233 = tpu.matmul %232, %219, %cst_91 {dimension_numbers = #tpu.dot_dimension_numbers<[2], [1], [1], [2], [0, 0, 0, 1, 1, 2], [0], [0]>} : vector<2x8x12xf32>, vector<2x12x16xf32>, vector<2x8x16xf32> -> vector<2x8x16xf32>
    %234 = vector.shape_cast %233 : vector<2x8x16xf32> to vector<16x16xf32>
    %c160 = arith.constant 160 : index
    %c0_92 = arith.constant 0 : index
    %235 = vector.load %arg4[%c160, %c0_92] : memref<240x128xf32, #tpu.memory_space<vmem>>, vector<16x16xf32>
    %cst_93 = arith.constant dense<0.000000e+00> : vector<16x16xf32>
    %236 = tpu.matmul %234, %235, %cst_93 {dimension_numbers = #tpu.dot_dimension_numbers<[1], [0], [0], [1], [0, 0, 1, 1], [], []>} : vector<16x16xf32>, vector<16x16xf32>, vector<16x16xf32> -> vector<16x16xf32>
    %c15 = arith.constant 15 : index
    %c0_94 = arith.constant 0 : index
    %237 = vector.load %arg5[%c15, %c0_94] : memref<32x128xf32, #tpu.memory_space<vmem>>, vector<1x16xf32>
    %238 = vector.broadcast %237 : vector<1x16xf32> to vector<16x16xf32>
    %239 = arith.addf %236, %238 : vector<16x16xf32>
    %240 = arith.addf %204, %239 : vector<16x16xf32>
    %c20 = arith.constant 20 : index
    %c0_95 = arith.constant 0 : index
    %241 = vector.load %arg5[%c20, %c0_95] : memref<32x128xf32, #tpu.memory_space<vmem>>, vector<1x16xf32>
    %c21 = arith.constant 21 : index
    %c0_96 = arith.constant 0 : index
    %242 = vector.load %arg5[%c21, %c0_96] : memref<32x128xf32, #tpu.memory_space<vmem>>, vector<1x16xf32>
    %cst_97 = arith.constant dense<0.000000e+00> : vector<16xf32>
    %243 = vector.multi_reduction <add>, %240, %cst_97 [1] : vector<16x16xf32> to vector<16xf32>
    %244 = vector.shape_cast %243 : vector<16xf32> to vector<16x1xf32>
    %cst_98 = arith.constant 1.600000e+01 : f32
    %245 = vector.broadcast %cst_98 : f32 to vector<16x1xf32>
    %246 = arith.divf %244, %245 : vector<16x1xf32>
    %247 = vector.broadcast %246 : vector<16x1xf32> to vector<16x16xf32>
    %248 = arith.subf %240, %247 : vector<16x16xf32>
    %249 = arith.mulf %248, %248 : vector<16x16xf32>
    %cst_99 = arith.constant dense<0.000000e+00> : vector<16xf32>
    %250 = vector.multi_reduction <add>, %249, %cst_99 [1] : vector<16x16xf32> to vector<16xf32>
    %251 = vector.shape_cast %250 : vector<16xf32> to vector<16x1xf32>
    %cst_100 = arith.constant 1.600000e+01 : f32
    %252 = vector.broadcast %cst_100 : f32 to vector<16x1xf32>
    %253 = arith.divf %251, %252 : vector<16x1xf32>
    %cst_101 = arith.constant 9.99999974E-6 : f32
    %254 = vector.broadcast %cst_101 : f32 to vector<16x1xf32>
    %255 = arith.addf %253, %254 : vector<16x1xf32>
    %256 = math.rsqrt %255 : vector<16x1xf32>
    %257 = vector.broadcast %256 : vector<16x1xf32> to vector<16x16xf32>
    %258 = arith.mulf %248, %257 : vector<16x16xf32>
    %259 = vector.broadcast %241 : vector<1x16xf32> to vector<16x16xf32>
    %260 = arith.mulf %258, %259 : vector<16x16xf32>
    %261 = vector.broadcast %242 : vector<1x16xf32> to vector<16x16xf32>
    %262 = arith.addf %260, %261 : vector<16x16xf32>
    %c176 = arith.constant 176 : index
    %c0_102 = arith.constant 0 : index
    %263 = vector.load %arg4[%c176, %c0_102] : memref<240x128xf32, #tpu.memory_space<vmem>>, vector<16x32xf32>
    %cst_103 = arith.constant dense<0.000000e+00> : vector<16x32xf32>
    %264 = tpu.matmul %262, %263, %cst_103 {dimension_numbers = #tpu.dot_dimension_numbers<[1], [0], [0], [1], [0, 0, 1, 1], [], []>} : vector<16x16xf32>, vector<16x32xf32>, vector<16x32xf32> -> vector<16x32xf32>
    %c16_104 = arith.constant 16 : index
    %c0_105 = arith.constant 0 : index
    %265 = vector.load %arg5[%c16_104, %c0_105] : memref<32x128xf32, #tpu.memory_space<vmem>>, vector<1x32xf32>
    %266 = vector.broadcast %265 : vector<1x32xf32> to vector<16x32xf32>
    %267 = arith.addf %264, %266 : vector<16x32xf32>
    %cst_106 = arith.constant 0.000000e+00 : f32
    %268 = vector.broadcast %cst_106 : f32 to vector<16x32xf32>
    %269 = arith.maximumf %267, %268 : vector<16x32xf32>
    %c192 = arith.constant 192 : index
    %c0_107 = arith.constant 0 : index
    %270 = vector.load %arg4[%c192, %c0_107] : memref<240x128xf32, #tpu.memory_space<vmem>>, vector<32x16xf32>
    %cst_108 = arith.constant dense<0.000000e+00> : vector<16x16xf32>
    %271 = tpu.matmul %269, %270, %cst_108 {dimension_numbers = #tpu.dot_dimension_numbers<[1], [0], [0], [1], [0, 0, 1, 1], [], []>} : vector<16x32xf32>, vector<32x16xf32>, vector<16x16xf32> -> vector<16x16xf32>
    %c17 = arith.constant 17 : index
    %c0_109 = arith.constant 0 : index
    %272 = vector.load %arg5[%c17, %c0_109] : memref<32x128xf32, #tpu.memory_space<vmem>>, vector<1x16xf32>
    %273 = vector.broadcast %272 : vector<1x16xf32> to vector<16x16xf32>
    %274 = arith.addf %271, %273 : vector<16x16xf32>
    %275 = arith.addf %262, %274 : vector<16x16xf32>
    %c22 = arith.constant 22 : index
    %c0_110 = arith.constant 0 : index
    %276 = vector.load %arg5[%c22, %c0_110] : memref<32x128xf32, #tpu.memory_space<vmem>>, vector<1x16xf32>
    %c23 = arith.constant 23 : index
    %c0_111 = arith.constant 0 : index
    %277 = vector.load %arg5[%c23, %c0_111] : memref<32x128xf32, #tpu.memory_space<vmem>>, vector<1x16xf32>
    %cst_112 = arith.constant dense<0.000000e+00> : vector<16xf32>
    %278 = vector.multi_reduction <add>, %275, %cst_112 [1] : vector<16x16xf32> to vector<16xf32>
    %279 = vector.shape_cast %278 : vector<16xf32> to vector<16x1xf32>
    %cst_113 = arith.constant 1.600000e+01 : f32
    %280 = vector.broadcast %cst_113 : f32 to vector<16x1xf32>
    %281 = arith.divf %279, %280 : vector<16x1xf32>
    %282 = vector.broadcast %281 : vector<16x1xf32> to vector<16x16xf32>
    %283 = arith.subf %275, %282 : vector<16x16xf32>
    %284 = arith.mulf %283, %283 : vector<16x16xf32>
    %cst_114 = arith.constant dense<0.000000e+00> : vector<16xf32>
    %285 = vector.multi_reduction <add>, %284, %cst_114 [1] : vector<16x16xf32> to vector<16xf32>
    %286 = vector.shape_cast %285 : vector<16xf32> to vector<16x1xf32>
    %cst_115 = arith.constant 1.600000e+01 : f32
    %287 = vector.broadcast %cst_115 : f32 to vector<16x1xf32>
    %288 = arith.divf %286, %287 : vector<16x1xf32>
    %cst_116 = arith.constant 9.99999974E-6 : f32
    %289 = vector.broadcast %cst_116 : f32 to vector<16x1xf32>
    %290 = arith.addf %288, %289 : vector<16x1xf32>
    %291 = math.rsqrt %290 : vector<16x1xf32>
    %292 = vector.broadcast %291 : vector<16x1xf32> to vector<16x16xf32>
    %293 = arith.mulf %283, %292 : vector<16x16xf32>
    %294 = vector.broadcast %276 : vector<1x16xf32> to vector<16x16xf32>
    %295 = arith.mulf %293, %294 : vector<16x16xf32>
    %296 = vector.broadcast %277 : vector<1x16xf32> to vector<16x16xf32>
    %297 = arith.addf %295, %296 : vector<16x16xf32>
    %c224 = arith.constant 224 : index
    %c0_117 = arith.constant 0 : index
    %298 = vector.load %arg4[%c224, %c0_117] : memref<240x128xf32, #tpu.memory_space<vmem>>, vector<16x1xf32>
    %cst_118 = arith.constant dense<0.000000e+00> : vector<16x1xf32>
    %299 = tpu.matmul %297, %298, %cst_118 {dimension_numbers = #tpu.dot_dimension_numbers<[1], [0], [0], [1], [0, 0, 1, 1], [], []>} : vector<16x16xf32>, vector<16x1xf32>, vector<16x1xf32> -> vector<16x1xf32>
    %c24 = arith.constant 24 : index
    %c0_119 = arith.constant 0 : index
    %300 = vector.load %arg5[%c24, %c0_119] : memref<32x128xf32, #tpu.memory_space<vmem>>, vector<1x1xf32>
    %301 = vector.broadcast %300 : vector<1x1xf32> to vector<16x1xf32>
    %302 = arith.addf %299, %301 : vector<16x1xf32>
    %cst_120 = arith.constant 0.000000e+00 : f32
    %303 = vector.broadcast %cst_120 : f32 to vector<16x1xf32>
    %304 = arith.subf %303, %302 : vector<16x1xf32>
    %305 = math.exp %304 : vector<16x1xf32>
    %cst_121 = arith.constant 1.000000e+00 : f32
    %306 = vector.broadcast %cst_121 : f32 to vector<16x1xf32>
    %307 = arith.addf %306, %305 : vector<16x1xf32>
    %cst_122 = arith.constant 1.000000e+00 : f32
    %308 = vector.broadcast %cst_122 : f32 to vector<16x1xf32>
    %309 = arith.divf %308, %307 : vector<16x1xf32>
    %c0_123 = arith.constant 0 : index
    %c0_124 = arith.constant 0 : index
    %c0_125 = arith.constant 0 : index
    %310 = vector.load %arg3[%c0_123, %c0_124, %c0_125] : memref<2x8x1xf32, #tpu.memory_space<vmem>>, vector<2x8x1xf32>
    %311 = vector.shape_cast %310 : vector<2x8x1xf32> to vector<16x1xf32>
    %312 = arith.addf %302, %311 : vector<16x1xf32>
    %cst_126 = arith.constant 0.000000e+00 : f32
    %313 = vector.broadcast %cst_126 : f32 to vector<16x1xf32>
    %314 = arith.cmpf ogt, %312, %313 : vector<16x1xf32>
    %cst_127 = arith.constant 1.000000e+00 : f32
    %cst_128 = arith.constant 0.000000e+00 : f32
    %315 = vector.broadcast %cst_127 : f32 to vector<16x1xf32>
    %316 = vector.broadcast %cst_128 : f32 to vector<16x1xf32>
    %317 = arith.select %314, %315, %316 : vector<16x1xi1>, vector<16x1xf32>
    %318 = tpu.concatenate %309, %317 in 1 : vector<16x1xf32>, vector<16x1xf32> -> vector<16x2xf32>
    %319 = vector.shape_cast %318 : vector<16x2xf32> to vector<2x8x2xf32>
    %c0_129 = arith.constant 0 : index
    %c0_130 = arith.constant 0 : index
    %c0_131 = arith.constant 0 : index
    %320 = vector.load %arg6[%c0_129, %c0_130, %c0_131] : memref<2x8x2xf32, #tpu.memory_space<vmem>>, vector<2x8x2xf32>
    tpu.vector_store %arg6[%c0_129, %c0_130, %c0_131], %319 {strides = array<i32>} : memref<2x8x2xf32, #tpu.memory_space<vmem>>, vector<2x8x2xf32>,
    return
  }
  func.func @transform_0(%arg0: i32) -> (i32, i32, i32) {
    %c0_i32 = arith.constant 0 : i32
    %c0_i32_0 = arith.constant 0 : i32
    %c0_i32_1 = arith.constant 0 : i32
    return %arg0, %c0_i32, %c0_i32_0 : i32, i32, i32
  }
  func.func @transform_1(%arg0: i32) -> (i32, i32, i32) {
    %c0_i32 = arith.constant 0 : i32
    %c0_i32_0 = arith.constant 0 : i32
    %c0_i32_1 = arith.constant 0 : i32
    return %arg0, %c0_i32, %c0_i32_0 : i32, i32, i32
  }
  func.func @transform_2(%arg0: i32) -> (i32, i32, i32) {
    %c0_i32 = arith.constant 0 : i32
    %c0_i32_0 = arith.constant 0 : i32
    %c0_i32_1 = arith.constant 0 : i32
    return %arg0, %c0_i32, %c0_i32_0 : i32, i32, i32
  }
  func.func @transform_3(%arg0: i32) -> (i32, i32) {
    %c0_i32 = arith.constant 0 : i32
    %c0_i32_0 = arith.constant 0 : i32
    %c0_i32_1 = arith.constant 0 : i32
    return %c0_i32, %c0_i32_0 : i32, i32
  }
  func.func @transform_4(%arg0: i32) -> (i32, i32) {
    %c0_i32 = arith.constant 0 : i32
    %c0_i32_0 = arith.constant 0 : i32
    %c0_i32_1 = arith.constant 0 : i32
    return %c0_i32, %c0_i32_0 : i32, i32
  }
  func.func @transform_5(%arg0: i32) -> (i32, i32, i32) {
    %c0_i32 = arith.constant 0 : i32
    %c0_i32_0 = arith.constant 0 : i32
    %c0_i32_1 = arith.constant 0 : i32
    return %arg0, %c0_i32, %c0_i32_0 : i32, i32, i32
  }
}

</mosaic_0001>

<bundles_post_ra>
// kernel: mask_generator_forecasting.1
= control target key start
LH: loop header
LB: loop body
LE: loop exit
PB: predicated region body
PF: predicated region fallthrough
CT: control target
= control target key end

     0   :  { %10 = vsyncpa [#allocation3], 0  ;;  %s3690_s18 = smov [#allocation2]   ;;  %s4094_s0 = inlined_call_operand.vmem [shape: f32[2,8,16], index: 0, kind: input, shape index: {}]   ;;  %s4095_s1 = inlined_call_operand.vmem [shape: f32[2,12,16], index: 1, kind: input, shape index: {}]   ;;  %s4096_s2 = inlined_call_operand.vmem [shape: f32[2,8,1], index: 2, kind: input, shape index: {}]   ;;  %s4097_s3 = inlined_call_operand.hbm [shape: f32[240,128], index: 3, kind: input, shape index: {}]   ;;  %s4098_s4 = inlined_call_operand.vmem [shape: f32[32,128], index: 4, kind: input, shape index: {}]   ;;  %s4099_s5 = inlined_call_operand.vmem [shape: f32[2,8,2], index: 5, kind: output, shape index: {}]  }
   0x1   :  { %s22_s19 = sshll.u32 %s3690_s18, 4  ;;  %s3666_s22 = scalar_lea.hbm %s4097_s3, 3840  ;;  %s23_s19 = int_to_ptr.vmem [resolvable:$true] %s22_s19 }
   0x2   :  { %p3667_p0 = scmp.ne.s32.totalorder %s4097_s3, %s3666_s22  ;;  %p3670_p1 = scmp.lt.u32.totalorder %s3666_s22, %s4097_s3 }
   0x4   :  { %p3672_p2 = pnand %p3670_p1, %p3667_p0 }
   0x6   :  { %3675 = shalt.err (!%p3672_p2)
}
   0x7   :  { %s3676_s27 = scalar_lea.vmem %s23_s19, 3840  ;;  %p3681_p4 = scmp.lt.s32.totalorder %s23_s19, %s23_s19 }
   0x8   :  { %p3677_p3 = scmp.ne.s32.totalorder %s23_s19, %s3676_s27  ;;  %p3682_p5 = scmp.lt.s32.totalorder %s3676_s27, %s3676_s27 }
   0xa   :  { %p3683_p6 = por %p3682_p5, %p3681_p4 }
   0xc   :  { %p3684_p7 = pnand %p3683_p6, %p3677_p3 }
   0xe   :  { %3687 = shalt.err (!%p3684_p7)
}
   0xf   :  { %s3691_s28 = smov 128   ;;  %s3692_s29 = smov 8  }
  0x10   :  { %28 = dma.hbm_to_vmem [thread:$0]  %s4097_s3, 3840, %s23_s19, [#allocation3], %s3691_s28, %s3691_s28, %s3692_s29  }
  0x11   :  { %3688 = dma.done.wait [#allocation3], 3840  }
  0x12   :  { %3689 = vsyncadd [#allocation3], 4294963456  ;;  %vm53_vm0 = vcmask 130048   ;;  %v46_v0 = vld [vmem:[#allocation2] sm:$0xff]  ;;  %v47_v1 = vld [vmem:[#allocation2 + $0x8] sm:$0xff]  ;;  %v3693_v5 = vmov 0.0  }
  0x13   :  { %v3745_v2 = vld [vmem:[%s4094_s0] sm:$0xff]  ;;  %v3456_v3 = vpack.c.bf16 %v47_v1, %v46_v0  ;;  %v3752_v4 = vld [vmem:[%s4094_s0 + $0x8] sm:$0xff]  ;;  %3242 = vmatprep.subr.mxu1 %v3693_v5  ;;  %vm3694_vm1 = vmmov 0   ;;  %s3695_s0 = smov 112   ;;  %vm291_vm2 = vcmask 64512   ;;  %s3696_s12 = smov 96   ;;  %vm3857_vm3 = vmpackc.low %vm53_vm0, %vm53_vm0 }
  0x14   :  { %3239 = vmatprep.mubr.msk.f32.mxu0 %vm53_vm0, %v3745_v2  ;;  %3244 = vmatprep.mubr.msk.f32.mxu1 %vm3694_vm1, %v3693_v5  ;;  %v3040_v6 = vld [vmem:[%s4098_s4] ss:$0 sm:$0xff]  ;;  %v466_v39 = vld [vmem:[#allocation2 + $0x10] sm:$0xff]  ;;  %v467_v40 = vld [vmem:[#allocation2 + $0x18] sm:$0xff]  ;;  %vm950_vm4 = vcmask 97280   ;;  %vm981_vm5 = vcmask 1043456  }
  0x15   :  { %3457 = vmatprep.subr.bf16.mxu0 %v3456_v3  ;;  %v3460_v41 = vpack.c.bf16 %v467_v40, %v466_v39  ;;  %v3049_v46 = vld [vmem:[%s4098_s4 + $0x1] ss:$0 sm:$0xff]  ;;  %vm3698_vm6 = vmmov 1   ;;  %vm1363_vm8 = vcmask 261120   ;;  %vm3029_vm11 = vcmask 7168  }
  0x16   :  { %3459 = vmatpush3.bf16.msra.mxu0 %v3456_v3  ;;  %v597_v1 = vld [vmem:[#allocation2 + $0x20] sm:$0xff]  ;;  %vm3878_vm7 = vmpackc.low %vm981_vm5, %vm3698_vm6  ;;  %vm3032_vm12 = vcmask 15360  }
  0x17   :  { %3247 = vmatprep.subr.mxu0 %v3693_v5 }
  0x19   :  { %3240 = vmatmul.mubr.msk.f32.vlgmr.msra.gmra.mrb[0].mxu0 %vm53_vm0, %v3752_v4 }
  0x1a   :  { %3249 = vmatprep.mubr.msk.f32.mxu0 %vm3694_vm1, %v3693_v5 }
  0xec   :  { %v3241_v7 = vpop.f32.mrb[0].mxu0 }
  0xed   :  { %v126_v8 = vpop.f32.mrb[1].mxu0  ;;  %v132_v10 = vadd.f32 %v3241_v7, %v3040_v6  ;;  %v3804_v7 = vld [vmem:[%s4098_s4 + $0x2] ss:$0 sm:$0xff] }
  0xee   :  { %v127_v9 = vadd.f32 %v3040_v6, %v126_v8 }
  0xf0   :  { %136 = vrot.lane.b32.xlu0 %v127_v9, %s3695_s0 }
  0xf4   :  { %213 = vrot.lane.b32.xlu0 %v132_v10, %s3695_s0 }
 0x162   :  { %v137_v11 = vpop.permute.xlu0 %136 }
 0x163   :  { %3243 = vmatpush3.xpose.msk.msra.mxu1 %vm53_vm0, %v137_v11 }
 0x164   :  { %3252 = vmatprep.subr.mxu1 %v3693_v5 }
 0x166   :  { %3245 = vmatmul.mubr.msk.f32.vlgmr.msra.gmra.mrb[0].mxu1 %vm53_vm0, %v127_v9  ;;  %v214_v12 = vpop.permute.xlu0 %213 }
 0x167   :  { %3248 = vmatpush3.xpose.msk.msra.mxu0 %vm53_vm0, %v214_v12  ;;  %3254 = vmatprep.mubr.msk.f32.mxu1 %vm3694_vm1, %v3693_v5 }
 0x168   :  { %3257 = vmatprep.subr.mxu0 %v3693_v5 }
 0x16a   :  { %3250 = vmatmul.mubr.msk.f32.vlgmr.msra.gmra.mrb[2].mxu0 %vm53_vm0, %v132_v10 }
 0x16b   :  { %3259 = vmatprep.mubr.msk.f32.mxu0 %vm3694_vm1, %v3693_v5 }
 0x239   :  { %v208_v13 = vpop.f32.mrb[0].mxu1 }
 0x23a   :  { %v289_v14 = vmul.f32 0.25, %v208_v13  ;;  %v3246_v15 = vpop.f32.mrb[1].mxu1  ;;  %v36_v13 = vld [vmem:[%s4095_s1] sm:$0xff] }
 0x23c   :  { %v292_v16 = vsel %vm291_vm2, %v289_v14, -inf }
 0x23d   :  { %293 = vmax.xlane.f32.xlu1 %v292_v16  ;;  %v285_v17 = vpop.f32.mrb[2].mxu0  ;;  %v44_v16 = vcombine.high %v36_v13, %v36_v13 }
 0x23e   :  { %v290_v18 = vmul.f32 0.25, %v285_v17  ;;  %v3251_v19 = vpop.f32.mrb[3].mxu0 }
 0x240   :  { %v295_v20 = vsel %vm291_vm2, %v290_v18, -inf }
 0x241   :  { %296 = vmax.xlane.f32.xlu1 %v295_v20  ;;  %v3811_v20 = vcombine.low %v36_v13, %v44_v16 }
 0x2ca   :  { %v294_v21 = vpop.xlane.xlu1 %293 }
 0x2cb   :  { %v298_v22 = vsub.f32 %v289_v14, %v294_v21  ;;  %v37_v21 = vld [vmem:[%s4095_s1 + $0x8] sm:$0xf] }
 0x2cd   :  { %v300_v23 = vmul.f32 1.442695, %v298_v22  ;;  %v38_v22 = vld [vmem:[%s4095_s1 + $0x10] sm:$0xff] }
 0x2ce   :  { %v297_v24 = vpop.xlane.xlu1 %296 }
 0x2cf   :  { %3602 = vpow2.f32 %v300_v23  ;;  %v299_v25 = vsub.f32 %v290_v18, %v297_v24  ;;  %v3822_v24 = vcombine.low %v37_v21, %v38_v22 }
 0x2d1   :  { %v302_v26 = vmul.f32 1.442695, %v299_v25  ;;  %v45_v25 = vcombine.high %v38_v22, %v38_v22 }
 0x2d3   :  { %3604 = vpow2.f32 %v302_v26 }
 0x2d9   :  { %v3603_v27 = vpop.eup %3602 }
 0x2da   :  { %v304_v28 = vsel %vm291_vm2, %v3603_v27, 0.0 }
 0x2db   :  { %305 = vadd.xlane.f32.xlu0 %v304_v28  ;;  %v3052_v28 = vld [vmem:[%s4098_s4 + $0x6] ss:$0 sm:$0xff] }
 0x2dd   :  { %v3605_v29 = vpop.eup %3604 }
 0x2de   :  { %v307_v30 = vsel %vm291_vm2, %v3605_v29, 0.0 }
 0x2df   :  { %308 = vadd.xlane.f32.xlu1 %v307_v30 }
 0x2f0   :  { %314 = vrot.lane.b32.xlu1 %v127_v9, %s3696_s12 }
 0x2f4   :  { %390 = vrot.lane.b32.xlu1 %v132_v10, %s3696_s12 }
 0x368   :  { %v306_v31 = vpop.xlane.xlu0 %305 }
 0x369   :  { %3606 = vrcp.f32 %v306_v31 }
 0x36c   :  { %v309_v32 = vpop.xlane.xlu1 %308 }
 0x36d   :  { %3608 = vrcp.f32 %v309_v32 }
 0x370   :  { %v315_v33 = vpop.permute.xlu1 %314 }
 0x371   :  { %3253 = vmatpush3.msra.mxu1 %v315_v33  ;;  %v3053_v33 = vld [vmem:[%s4098_s4 + $0x7] ss:$0 sm:$0xff] }
 0x372   :  { %3461 = vmatprep.subr.bf16.mxu1 %v3460_v41 }
 0x373   :  { %v3607_v34 = vpop.eup %3606 }
 0x374   :  { %v312_v35 = vmul.f32 %v3607_v34, %v3603_v27  ;;  %v391_v36 = vpop.permute.xlu1 %390  ;;  %v39_v27 = vld [vmem:[%s4095_s1 + $0x18] sm:$0xf] }
 0x375   :  { %3258 = vmatpush3.msra.mxu0 %v391_v36  ;;  %v3834_v30 = vcombine.low %v45_v25, %v39_v27  ;;  %v3113_v25 = vld [vmem:[%s4098_s4 + $0xf] ss:$0 sm:$0xff] }
 0x376   :  { %3255 = vmatmul.mubr.msk.f32.vlgmr.msra.gmra.mrb[2].mxu1 %vm291_vm2, %v312_v35 }
 0x377   :  { %v3609_v37 = vpop.eup %3608  ;;  %3463 = vmatpush3.bf16.msra.mxu1 %v3460_v41 }
 0x378   :  { %v313_v38 = vmul.f32 %v3609_v37, %v3605_v29 }
 0x37a   :  { %3260 = vmatmul.mubr.msk.f32.vlgmr.msra.gmra.mrb[4].mxu0 %vm291_vm2, %v313_v38 }
 0x449   :  { %v386_v42 = vpop.f32.mrb[2].mxu1 }
 0x44a   :  { %v3256_v43 = vpop.f32.mrb[3].mxu1  ;;  %3266 = vmatprep.mubr.msk.f32.mxu1 %vm53_vm0, %v386_v42 }
 0x44d   :  { %v462_v44 = vpop.f32.mrb[4].mxu0 }
 0x44e   :  { %v3261_v45 = vpop.f32.mrb[5].mxu0  ;;  %3267 = vmatmul.mubr.msk.f32.vlgmr.msra.gmra.mrb[4].mxu1 %vm53_vm0, %v462_v44 }
 0x44f   :  { %3280 = vmatprep.mubr.msk.f32.mxu1 %vm3694_vm1, %v3693_v5 }
 0x521   :  { %v3268_v47 = vpop.f32.mrb[4].mxu1 }
 0x522   :  { %v551_v48 = vadd.f32 %v3268_v47, %v3049_v46  ;;  %v545_v49 = vpop.f32.mrb[5].mxu1 }
 0x523   :  { %v546_v50 = vadd.f32 %v3049_v46, %v545_v49 }
 0x524   :  { %v555_v51 = vadd.f32 %v551_v48, %v3752_v4  ;;  %v3697_v4 = vmov 0.0|0.0  }
 0x525   :  { %v554_v52 = vadd.f32 %v546_v50, %v3745_v2  ;;  %v598_v2 = vld [vmem:[#allocation2 + $0x28] sm:$0xff]  ;;  %3468 = vmatprep.subr.bf16.mxu1 %v3697_v4 }
 0x526   :  { %v561_v53 = vsel %vm53_vm0, %v555_v51, 0.0  ;;  %v3564_v3 = vpack.i.bf16 %v598_v2, %v597_v1  ;;  %v3464_v6 = vpack.c.bf16 %v598_v2, %v597_v1 }
 0x527   :  { %562 = vadd.xlane.f32.xlu0 %v561_v53  ;;  %v558_v54 = vsel %vm53_vm0, %v554_v52, 0.0 }
 0x528   :  { %559 = vadd.xlane.f32.xlu1 %v558_v54  ;;  %3465 = vmatprep.subr.bf16.mxu0 %v3464_v6 }
 0x529   :  { %3467 = vmatpush3.bf16.msra.mxu0 %v3464_v6 }
 0x52a   :  { %3471 = vmatprep.subr.bf16.mxu0 %v3697_v4 }
 0x539   :  { %697 = vrot.lane.b32.xlu1 %v3804_v7, %s3695_s0 }
 0x5b4   :  { %v563_v55 = vpop.xlane.xlu0 %562 }
 0x5b5   :  { %v566_v56 = vmul.f32 0.0625, %v563_v55  ;;  %v560_v57 = vpop.xlane.xlu1 %559 }
 0x5b6   :  { %v565_v58 = vmul.f32 0.0625, %v560_v57 }
 0x5b7   :  { %v568_v59 = vsub.f32 %v555_v51, %v566_v56 }
 0x5b8   :  { %v567_v60 = vsub.f32 %v554_v52, %v565_v58 }
 0x5b9   :  { %v570_v61 = vmul.f32 %v568_v59, %v568_v59  ;;  %v698_v37 = vpop.permute.xlu1 %697 }
 0x5ba   :  { %v569_v63 = vmul.f32 %v567_v60, %v567_v60 }
 0x5bb   :  { %v574_v62 = vsel %vm53_vm0, %v570_v61, 0.0 }
 0x5bc   :  { %575 = vadd.xlane.f32.xlu0 %v574_v62  ;;  %v571_v0 = vsel %vm53_vm0, %v569_v63, 0.0 }
 0x5c0   :  { %572 = vadd.xlane.f32.xlu0 %v571_v0 }
 0x5d6   :  { %3565 = vrot.lane.b32.xlu0 %v3564_v3, %s3695_s0 }
 0x649   :  { %v576_v8 = vpop.xlane.xlu0 %575 }
 0x64a   :  { %v578_v9 = vmul.f32 0.0625, %v576_v8 }
 0x64c   :  { %v580_v10 = vadd.f32 1e-05, %v578_v9 }
 0x64d   :  { %v573_v11 = vpop.xlane.xlu0 %572 }
 0x64e   :  { %3610 = vrsqrt.f32 %v580_v10  ;;  %v577_v12 = vmul.f32 0.0625, %v573_v11 }
 0x650   :  { %v579_v14 = vadd.f32 1e-05, %v577_v12 }
 0x651   :  { %v3566_v15 = vpop.permute.xlu0 %3565 }
 0x652   :  { %3612 = vrsqrt.f32 %v579_v14  ;;  %v3568_v17 = vunpack.i.h.bf16 %v3566_v15  ;;  %v3567_v18 = vunpack.i.l.bf16 %v3566_v15 }
 0x654   :  { %v3469_v19 = vpack.c.bf16 %v3568_v17, %v3567_v18 }
 0x656   :  { %3470 = vmatpush3.bf16.msra.mxu1 %v3469_v19 }
 0x657   :  { %3475 = vmatprep.subr.bf16.mxu1 %v3697_v4 }
 0x658   :  { %v3611_v23 = vpop.eup %3610 }
 0x659   :  { %3281 = vmatmul.mubr.msk.f32.vlgmr.msra.gmra.mrb[6].mxu1 %vm53_vm0, %v3811_v20  ;;  %v584_v26 = vmul.f32 %v3611_v23, %v568_v59 }
 0x65a   :  { %3283 = vmatprep.mubr.msk.f32.mxu1 %vm3694_vm1, %v3693_v5 }
 0x65b   :  { %v590_v32 = vmul.f32 %v3052_v28, %v584_v26 }
 0x65c   :  { %v3613_v29 = vpop.eup %3612 }
 0x65d   :  { %3284 = vmatmul.mubr.msk.f32.gmra.mrb[8].mxu1 %vm53_vm0, %v3822_v24  ;;  %v583_v31 = vmul.f32 %v3613_v29, %v567_v60  ;;  %v3845_v36 = vadd.f32 %v3053_v33, %v590_v32 }
 0x65e   :  { %3286 = vmatprep.mubr.msk.f32.mxu1 %vm3694_vm1, %v3693_v5 }
 0x65f   :  { %v589_v34 = vmul.f32 %v3052_v28, %v583_v31 }
 0x661   :  { %3287 = vmatmul.mubr.msk.f32.gmra.mrb[10].mxu1 %vm53_vm0, %v3834_v30  ;;  %v3843_v35 = vadd.f32 %v3053_v33, %v589_v34 }
 0x662   :  { %3300 = vmatprep.mubr.msk.f32.mxu1 %vm3694_vm1, %v3693_v5 }
 0x663   :  { %3273 = vmatprep.mubr.msk.f32.mxu0 %vm53_vm0, %v3843_v35 }
 0x664   :  { %3274 = vmatmul.mubr.msk.f32.vlgmr.msra.gmra.mrb[6].mxu0 %vm53_vm0, %v3845_v36 }
 0x665   :  { %3293 = vmatprep.mubr.msk.f32.mxu0 %vm3694_vm1, %v3693_v5 }
 0x72c   :  { %v772_v38 = vpop.f32.mrb[6].mxu1 }
 0x72d   :  { %v773_v39 = vadd.f32 %v772_v38, %v698_v37  ;;  %v3282_v40 = vpop.f32.mrb[7].mxu1  ;;  %v1135_v38 = vld [vmem:[#allocation2 + $0x38] sm:$0xff] }
 0x72f   :  { %v789_v41 = vcombine.high %v773_v39, %v773_v39 }
 0x730   :  { %v777_v42 = vpop.f32.mrb[8].mxu1 }
 0x731   :  { %v792_v43 = vcombine.low %v773_v39, %v789_v41  ;;  %v778_v44 = vadd.f32 %v777_v42, %v698_v37  ;;  %v3285_v45 = vpop.f32.mrb[9].mxu1 }
 0x733   :  { %v3472_v47 = vpack.c.bf16 %v778_v44, %v792_v43  ;;  %v3569_v48 = vpack.i.bf16 %v778_v44, %v792_v43  ;;  %v790_v51 = vcombine.high %v778_v44, %v778_v44  ;;  %v3070_v44 = vld [vmem:[%s4098_s4 + $0x3] ss:$0 sm:$0xff] }
 0x734   :  { %v782_v49 = vpop.f32.mrb[10].mxu1 }
 0x735   :  { %v783_v50 = vadd.f32 %v782_v49, %v698_v37  ;;  %v3288_v52 = vpop.f32.mrb[11].mxu1  ;;  %3474 = vmatpush3.bf16.xpose.msk.msra.mxu0 %vm3857_vm3, %v3472_v47  ;;  %v1134_v37 = vld [vmem:[#allocation2 + $0x30] sm:$0xff] }
 0x736   :  { %3479 = vmatprep.subr.bf16.mxu0 %v3697_v4  ;;  %v3487_v39 = vpack.c.bf16 %v1135_v38, %v1134_v37  ;;  %v3078_v38 = vld [vmem:[%s4098_s4 + $0x5] ss:$0 sm:$0xff] }
 0x737   :  { %v791_v53 = vcombine.high %v783_v50, %v783_v50  ;;  %v870_v54 = vcombine.low %v790_v51, %v783_v50  ;;  %v3275_v55 = vpop.f32.mrb[6].mxu0 }
 0x738   :  { %v676_v56 = vpop.f32.mrb[7].mxu0  ;;  %v682_v60 = vadd.f32 %v3275_v55, %v3804_v7 }
 0x739   :  { %v3476_v57 = vpack.c.bf16 %v791_v53, %v870_v54  ;;  %v677_v58 = vadd.f32 %v3804_v7, %v676_v56  ;;  %v3574_v59 = vpack.i.bf16 %v791_v53, %v870_v54 }
 0x73b   :  { %3478 = vmatpush3.bf16.xpose.msk.msra.mxu1 %vm3857_vm3, %v3476_v57 }
 0x73c   :  { %3294 = vmatmul.mubr.msk.f32.vlgmr.msra.gmra.mrb[8].mxu0 %vm53_vm0, %v677_v58  ;;  %3488 = vmatprep.subr.bf16.mxu1 %v3487_v39 }
 0x73d   :  { %3307 = vmatprep.mubr.msk.f32.mxu0 %vm3694_vm1, %v3693_v5 }
 0x742   :  { %3301 = vmatmul.mubr.msk.f32.vlgmr.msra.gmra.mrb[12].mxu1 %vm53_vm0, %v682_v60 }
 0x743   :  { %3490 = vmatpush3.bf16.msra.mxu1 %v3487_v39 }
 0x80f   :  { %v866_v61 = vpop.f32.mrb[8].mxu0 }
 0x810   :  { %v948_v62 = vmul.f32 0.25, %v866_v61  ;;  %v3295_v63 = vpop.f32.mrb[9].mxu0 }
 0x811   :  { %v1265_v63 = vld [vmem:[#allocation2 + $0x48] sm:$0xff] }
 0x812   :  { %v951_v0 = vsel %vm950_vm4, %v948_v62, -inf }
 0x813   :  { %952 = vmax.xlane.f32.xlu0 %v951_v0 }
 0x815   :  { %v944_v1 = vpop.f32.mrb[12].mxu1 }
 0x816   :  { %v949_v2 = vmul.f32 0.25, %v944_v1  ;;  %v3302_v3 = vpop.f32.mrb[13].mxu1  ;;  %v1354_v1 = vld [vmem:[#allocation2 + $0x50] sm:$0xff] }
 0x818   :  { %v954_v6 = vsel %vm950_vm4, %v949_v2, -inf }
 0x819   :  { %955 = vmax.xlane.f32.xlu1 %v954_v6 }
 0x82a   :  { %3575 = vrot.lane.b32.xlu1 %v3574_v59, %s3695_s0 }
 0x8a0   :  { %v953_v8 = vpop.xlane.xlu0 %952 }
 0x8a1   :  { %v957_v9 = vsub.f32 %v948_v62, %v953_v8 }
 0x8a3   :  { %v959_v11 = vmul.f32 1.442695, %v957_v9 }
 0x8a6   :  { %v956_v7 = vpop.xlane.xlu1 %955 }
 0x8a7   :  { %v958_v10 = vsub.f32 %v949_v2, %v956_v7  ;;  %v1355_v2 = vld [vmem:[#allocation2 + $0x58] sm:$0xff] }
 0x8a8   :  { %v3495_v3 = vpack.c.bf16 %v1355_v2, %v1354_v1  ;;  %v3081_v2 = vld [vmem:[%s4098_s4 + $0xa] ss:$0 sm:$0xff] }
 0x8a9   :  { %v961_v12 = vmul.f32 1.442695, %v958_v10 }
 0x8aa   :  { %v3576_v23 = vpop.permute.xlu1 %3575  ;;  %3496 = vmatprep.subr.bf16.mxu1 %v3495_v3 }
 0x8ab   :  { %3614 = vpow2.f32 %v961_v12  ;;  %v3578_v27 = vunpack.i.h.bf16 %v3576_v23  ;;  %v3577_v28 = vunpack.i.l.bf16 %v3576_v23  ;;  %v1356_v23 = vld [vmem:[#allocation2 + $0x60] sm:$0xff] }
 0x8ac   :  { %3616 = vpow2.f32 %v959_v11 }
 0x8ad   :  { %v3484_v33 = vpack.c.bf16 %v3578_v27, %v3577_v28  ;;  %v3075_v28 = vld [vmem:[%s4098_s4 + $0x4] ss:$0 sm:$0xff] }
 0x8b5   :  { %v3615_v13 = vpop.eup %3614 }
 0x8b6   :  { %v966_v14 = vsel %vm950_vm4, %v3615_v13, 0.0  ;;  %v3617_v15 = vpop.eup %3616 }
 0x8b7   :  { %967 = vadd.xlane.f32.xlu0 %v966_v14  ;;  %v963_v16 = vsel %vm950_vm4, %v3617_v15, 0.0 }
 0x8bb   :  { %964 = vadd.xlane.f32.xlu0 %v963_v16 }
 0x8d1   :  { %3570 = vrot.lane.b32.xlu0 %v3569_v48, %s3695_s0 }
 0x944   :  { %v968_v17 = vpop.xlane.xlu0 %967 }
 0x948   :  { %v965_v18 = vpop.xlane.xlu0 %964 }
 0x949   :  { %3618 = vrcp.f32 %v965_v18 }
 0x94a   :  { %3620 = vrcp.f32 %v968_v17 }
 0x94c   :  { %v3571_v19 = vpop.permute.xlu0 %3570 }
 0x94d   :  { %v3573_v21 = vunpack.i.h.bf16 %v3571_v19  ;;  %v3572_v22 = vunpack.i.l.bf16 %v3571_v19 }
 0x94f   :  { %v3480_v26 = vpack.c.bf16 %v3573_v21, %v3572_v22 }
 0x951   :  { %3482 = vmatpush3.bf16.msk.msra.mxu0 %vm3878_vm7, %v3480_v26  ;;  %v1357_v26 = vld [vmem:[#allocation2 + $0x68] sm:$0xff] }
 0x952   :  { %3483 = vmatprep.subr.bf16.mxu0 %v3697_v4  ;;  %v3499_v27 = vpack.c.bf16 %v1357_v26, %v1356_v23 }
 0x953   :  { %v3619_v29 = vpop.eup %3618 }
 0x954   :  { %v971_v31 = vmul.f32 %v3619_v29, %v3617_v15  ;;  %v3621_v32 = vpop.eup %3620  ;;  %v3074_v15 = vld [vmem:[%s4098_s4 + $0x9] ss:$0 sm:$0xff] }
 0x955   :  { %v972_v34 = vmul.f32 %v3621_v32, %v3615_v13  ;;  %v3073_v13 = vld [vmem:[%s4098_s4 + $0x8] ss:$0 sm:$0xff] }
 0x956   :  { %3308 = vmatmul.mubr.msk.f32.vlgmr.msra.gmra.mrb[10].mxu0 %vm950_vm4, %v971_v31 }
 0x957   :  { %3486 = vmatpush3.bf16.msk.msra.mxu0 %vm3878_vm7, %v3484_v33  ;;  %3314 = vmatprep.mubr.msk.f32.mxu0 %vm3694_vm1, %v3693_v5 }
 0x95a   :  { %3315 = vmatmul.mubr.msk.f32.vlgmr.msra.gmra.mrb[12].mxu0 %vm950_vm4, %v972_v34 }
 0xa29   :  { %v1050_v40 = vpop.f32.mrb[10].mxu0 }
 0xa2a   :  { %v3309_v41 = vpop.f32.mrb[11].mxu0  ;;  %3321 = vmatprep.mubr.msk.f32.mxu1 %vm53_vm0, %v1050_v40 }
 0xa2d   :  { %v1130_v42 = vpop.f32.mrb[12].mxu0 }
 0xa2e   :  { %v3316_v43 = vpop.f32.mrb[13].mxu0  ;;  %3322 = vmatmul.mubr.msk.f32.vlgmr.msra.gmra.mrb[14].mxu1 %vm53_vm0, %v1130_v42 }
 0xa2f   :  { %3498 = vmatpush3.bf16.msra.mxu1 %v3495_v3 }
 0xa30   :  { %3500 = vmatprep.subr.bf16.mxu1 %v3499_v27 }
 0xa33   :  { %3502 = vmatpush3.bf16.msra.mxu1 %v3499_v27 }
 0xa34   :  { %3354 = vmatprep.subr.mxu1 %v3693_v5 }
 0xb01   :  { %v3323_v45 = vpop.f32.mrb[14].mxu1 }
 0xb02   :  { %v1219_v47 = vadd.f32 %v3323_v45, %v3070_v44  ;;  %v1213_v48 = vpop.f32.mrb[15].mxu1 }
 0xb03   :  { %v1214_v49 = vadd.f32 %v3070_v44, %v1213_v48 }
 0xb04   :  { %v1223_v50 = vadd.f32 %v1219_v47, %v3845_v36 }
 0xb05   :  { %v1222_v51 = vadd.f32 %v1214_v49, %v3843_v35  ;;  %v1264_v35 = vld [vmem:[#allocation2 + $0x40] sm:$0xff] }
 0xb06   :  { %v1229_v52 = vsel %vm53_vm0, %v1223_v50, 0.0  ;;  %v3491_v0 = vpack.c.bf16 %v1265_v63, %v1264_v35 }
 0xb07   :  { %1230 = vadd.xlane.f32.xlu1 %v1229_v52  ;;  %v1226_v53 = vsel %vm53_vm0, %v1222_v51, 0.0 }
 0xb08   :  { %1227 = vadd.xlane.f32.xlu0 %v1226_v53  ;;  %3492 = vmatprep.subr.bf16.mxu0 %v3491_v0 }
 0xb09   :  { %3494 = vmatpush3.bf16.msra.mxu0 %v3491_v0 }
 0xb94   :  { %v1231_v54 = vpop.xlane.xlu1 %1230 }
 0xb95   :  { %v1233_v55 = vmul.f32 0.0625, %v1231_v54  ;;  %v1228_v56 = vpop.xlane.xlu0 %1227 }
 0xb96   :  { %v1232_v57 = vmul.f32 0.0625, %v1228_v56 }
 0xb97   :  { %v1235_v58 = vsub.f32 %v1223_v50, %v1233_v55 }
 0xb98   :  { %v1234_v59 = vsub.f32 %v1222_v51, %v1232_v57 }
 0xb99   :  { %v1237_v62 = vmul.f32 %v1235_v58, %v1235_v58 }
 0xb9a   :  { %v1236_v60 = vmul.f32 %v1234_v59, %v1234_v59 }
 0xb9b   :  { %v1241_v36 = vsel %vm53_vm0, %v1237_v62, 0.0 }
 0xb9c   :  { %v1238_v61 = vsel %vm53_vm0, %v1236_v60, 0.0 }
 0xb9d   :  { %1239 = vadd.xlane.f32.xlu0 %v1238_v61 }
 0xba1   :  { %1242 = vadd.xlane.f32.xlu0 %v1241_v36 }
 0xc2a   :  { %v1240_v6 = vpop.xlane.xlu0 %1239 }
 0xc2b   :  { %v1244_v8 = vmul.f32 0.0625, %v1240_v6 }
 0xc2d   :  { %v1246_v9 = vadd.f32 1e-05, %v1244_v8 }
 0xc2e   :  { %v1243_v7 = vpop.xlane.xlu0 %1242 }
 0xc2f   :  { %3622 = vrsqrt.f32 %v1246_v9  ;;  %v1245_v10 = vmul.f32 0.0625, %v1243_v7  ;;  %v3082_v9 = vld [vmem:[%s4098_s4 + $0xb] ss:$0 sm:$0xff] }
 0xc31   :  { %v1247_v11 = vadd.f32 1e-05, %v1245_v10 }
 0xc33   :  { %3624 = vrsqrt.f32 %v1247_v11 }
 0xc39   :  { %v3623_v12 = vpop.eup %3622 }
 0xc3a   :  { %v1250_v14 = vmul.f32 %v3623_v12, %v1234_v59  ;;  %v1488_v59 = vld [vmem:[#allocation2 + $0x78] sm:$0xff] }
 0xc3c   :  { %v1256_v16 = vmul.f32 %v3073_v13, %v1250_v14 }
 0xc3d   :  { %v3625_v17 = vpop.eup %3624 }
 0xc3e   :  { %v1251_v18 = vmul.f32 %v3625_v17, %v1235_v58  ;;  %v1262_v19 = vadd.f32 %v3074_v15, %v1256_v16  ;;  %v1487_v58 = vld [vmem:[#allocation2 + $0x70] sm:$0xff] }
 0xc3f   :  { %v3503_v60 = vpack.c.bf16 %v1488_v59, %v1487_v58 }
 0xc40   :  { %v1257_v21 = vmul.f32 %v3073_v13, %v1251_v18  ;;  %3328 = vmatprep.mubr.msk.f32.mxu0 %vm53_vm0, %v1262_v19  ;;  %v3083_v13 = vld [vmem:[%s4098_s4 + $0xc] ss:$0 sm:$0xff] }
 0xc41   :  { %3504 = vmatprep.subr.bf16.mxu0 %v3503_v60 }
 0xc42   :  { %v1263_v22 = vadd.f32 %v3074_v15, %v1257_v21 }
 0xc44   :  { %3329 = vmatmul.mubr.msk.f32.vlgmr.msra.gmra.mrb[14].mxu0 %vm53_vm0, %v1263_v22 }
 0xc45   :  { %3506 = vmatpush3.bf16.msra.mxu0 %v3503_v60  ;;  %v3092_v60 = vld [vmem:[%s4098_s4 + $0xd] ss:$0 sm:$0xff] }
 0xc46   :  { %3349 = vmatprep.subr.mxu0 %v3693_v5 }
 0xd17   :  { %v3330_v29 = vpop.f32.mrb[14].mxu0 }
 0xd18   :  { %v1349_v31 = vadd.f32 %v3330_v29, %v3075_v28  ;;  %v1343_v32 = vpop.f32.mrb[15].mxu0 }
 0xd19   :  { %v1344_v33 = vadd.f32 %v3075_v28, %v1343_v32 }
 0xd1a   :  { %v1353_v37 = vmax.f32 %v1349_v31, 0.0 }
 0xd1b   :  { %v1352_v34 = vmax.f32 %v1344_v33, 0.0 }
 0xd1d   :  { %3339 = vmatprep.mubr.msk.f32.mxu1 %vm1363_vm8, %v1352_v34 }
 0xd1e   :  { %3340 = vmatmul.mubr.msk.f32.vlgmr.msra.gmra.mrb[16].mxu1 %vm1363_vm8, %v1353_v37 }
 0xd1f   :  { %3356 = vmatprep.mubr.msk.f32.mxu1 %vm3694_vm1, %v3693_v5 }
 0xdf1   :  { %v3341_v39 = vpop.f32.mrb[16].mxu1 }
 0xdf2   :  { %v1442_v40 = vadd.f32 %v3341_v39, %v3078_v38  ;;  %v1436_v41 = vpop.f32.mrb[17].mxu1 }
 0xdf3   :  { %v1437_v42 = vadd.f32 %v3078_v38, %v1436_v41 }
 0xdf4   :  { %v1446_v43 = vadd.f32 %v1442_v40, %v1263_v22 }
 0xdf5   :  { %v1445_v44 = vadd.f32 %v1437_v42, %v1262_v19 }
 0xdf6   :  { %v1452_v45 = vsel %vm53_vm0, %v1446_v43, 0.0 }
 0xdf7   :  { %1453 = vadd.xlane.f32.xlu1 %v1452_v45  ;;  %v1449_v47 = vsel %vm53_vm0, %v1445_v44, 0.0  ;;  %v1905_v45 = vld [vmem:[#allocation2 + $0x80] sm:$0xff] }
 0xdf8   :  { %1450 = vadd.xlane.f32.xlu0 %v1449_v47  ;;  %v1906_v47 = vld [vmem:[#allocation2 + $0x88] sm:$0xff] }
 0xe84   :  { %v1454_v48 = vpop.xlane.xlu1 %1453 }
 0xe85   :  { %v1456_v49 = vmul.f32 0.0625, %v1454_v48  ;;  %v1451_v50 = vpop.xlane.xlu0 %1450 }
 0xe86   :  { %v1455_v51 = vmul.f32 0.0625, %v1451_v50 }
 0xe87   :  { %v1458_v52 = vsub.f32 %v1446_v43, %v1456_v49  ;;  %v3507_v49 = vpack.c.bf16 %v1906_v47, %v1905_v45 }
 0xe88   :  { %v1457_v53 = vsub.f32 %v1445_v44, %v1455_v51 }
 0xe89   :  { %v1460_v54 = vmul.f32 %v1458_v52, %v1458_v52 }
 0xe8a   :  { %v1459_v55 = vmul.f32 %v1457_v53, %v1457_v53 }
 0xe8b   :  { %v1464_v56 = vsel %vm53_vm0, %v1460_v54, 0.0 }
 0xe8c   :  { %1465 = vadd.xlane.f32.xlu1 %v1464_v56  ;;  %v1461_v57 = vsel %vm53_vm0, %v1459_v55, 0.0 }
 0xe8d   :  { %1462 = vadd.xlane.f32.xlu0 %v1461_v57 }
 0xf19   :  { %v1466_v61 = vpop.xlane.xlu1 %1465 }
 0xf1a   :  { %v1468_v62 = vmul.f32 0.0625, %v1466_v61  ;;  %v1463_v36 = vpop.xlane.xlu0 %1462 }
 0xf1b   :  { %v1467_v35 = vmul.f32 0.0625, %v1463_v36 }
 0xf1c   :  { %v1470_v63 = vadd.f32 1e-05, %v1468_v62 }
 0xf1d   :  { %v1469_v0 = vadd.f32 1e-05, %v1467_v35 }
 0xf1e   :  { %3626 = vrsqrt.f32 %v1470_v63 }
 0xf1f   :  { %3628 = vrsqrt.f32 %v1469_v0 }
 0xf28   :  { %v3627_v1 = vpop.eup %3626 }
 0xf29   :  { %v3629_v3 = vpop.eup %3628  ;;  %v1474_v6 = vmul.f32 %v3627_v1, %v1458_v52 }
 0xf2a   :  { %v1473_v8 = vmul.f32 %v3629_v3, %v1457_v53 }
 0xf2b   :  { %v1480_v7 = vmul.f32 %v3081_v2, %v1474_v6 }
 0xf2c   :  { %v1479_v10 = vmul.f32 %v3081_v2, %v1473_v8 }
 0xf2d   :  { %v3934_v12 = vadd.f32 %v3082_v9, %v1480_v7 }
 0xf2e   :  { %v3932_v11 = vadd.f32 %v3082_v9, %v1479_v10 }
 0xf30   :  { %3346 = vmatprep.mubr.msk.f32.mxu0 %vm53_vm0, %v3932_v11 }
 0xf31   :  { %3347 = vmatmul.mubr.msk.f32.vlgmr.msra.gmra.mrb[16].mxu0 %vm53_vm0, %v3934_v12 }
 0xf32   :  { %3351 = vmatprep.mubr.msk.f32.mxu0 %vm3694_vm1, %v3693_v5 }
0x1004   :  { %v3348_v14 = vpop.f32.mrb[16].mxu0 }
0x1005   :  { %v1572_v15 = vadd.f32 %v3348_v14, %v3083_v13  ;;  %v1566_v16 = vpop.f32.mrb[17].mxu0 }
0x1006   :  { %v1567_v17 = vadd.f32 %v3083_v13, %v1566_v16  ;;  %v2036_v16 = vld [vmem:[#allocation2 + $0x98] sm:$0xff] }
0x1007   :  { %1653 = vrot.lane.b32.xlu1 %v1572_v15, %s3695_s0 }
0x1008   :  { %1576 = vrot.lane.b32.xlu0 %v1567_v17, %s3695_s0 }
0x1079   :  { %v1654_v18 = vpop.permute.xlu1 %1653 }
0x107a   :  { %3355 = vmatpush3.xpose.msk.msra.mxu1 %vm53_vm0, %v1654_v18  ;;  %v1577_v19 = vpop.permute.xlu0 %1576 }
0x107b   :  { %3350 = vmatpush3.xpose.msk.msra.mxu0 %vm53_vm0, %v1577_v19  ;;  %3364 = vmatprep.subr.mxu1 %v3693_v5  ;;  %v3097_v19 = vld [vmem:[%s4098_s4 + $0xe] ss:$0 sm:$0xff] }
0x107c   :  { %3359 = vmatprep.subr.mxu0 %v3693_v5 }
0x107d   :  { %3357 = vmatmul.mubr.msk.f32.vlgmr.msra.gmra.mrb[18].mxu1 %vm53_vm0, %v1572_v15 }
0x107e   :  { %3352 = vmatmul.mubr.msk.f32.vlgmr.msra.gmra.mrb[18].mxu0 %vm53_vm0, %v1567_v17  ;;  %3366 = vmatprep.mubr.msk.f32.mxu1 %vm3694_vm1, %v3693_v5 }
0x107f   :  { %3361 = vmatprep.mubr.msk.f32.mxu0 %vm3694_vm1, %v3693_v5 }
0x1150   :  { %v1725_v21 = vpop.f32.mrb[18].mxu1 }
0x1151   :  { %v1730_v22 = vmul.f32 0.25, %v1725_v21  ;;  %v1648_v23 = vpop.f32.mrb[18].mxu0  ;;  %v3358_v26 = vpop.f32.mrb[19].mxu1 }
0x1152   :  { %v1729_v27 = vmul.f32 0.25, %v1648_v23  ;;  %v3353_v28 = vpop.f32.mrb[19].mxu0 }
0x1153   :  { %v1734_v29 = vsel %vm291_vm2, %v1730_v22, -inf }
0x1154   :  { %1735 = vmax.xlane.f32.xlu0 %v1734_v29  ;;  %v1731_v31 = vsel %vm291_vm2, %v1729_v27, -inf }
0x1155   :  { %1732 = vmax.xlane.f32.xlu1 %v1731_v31 }
0x11e1   :  { %v1736_v32 = vpop.xlane.xlu0 %1735 }
0x11e2   :  { %v1738_v33 = vsub.f32 %v1730_v22, %v1736_v32  ;;  %v1733_v34 = vpop.xlane.xlu1 %1732 }
0x11e3   :  { %v1737_v37 = vsub.f32 %v1729_v27, %v1733_v34 }
0x11e4   :  { %v1741_v38 = vmul.f32 1.442695, %v1738_v33 }
0x11e5   :  { %v1739_v39 = vmul.f32 1.442695, %v1737_v37  ;;  %v3095_v37 = vld [vmem:[%s4098_s4 + $0x12] ss:$0 sm:$0xff] }
0x11e6   :  { %3630 = vpow2.f32 %v1741_v38 }
0x11e7   :  { %3632 = vpow2.f32 %v1739_v39 }
0x11f0   :  { %v3631_v40 = vpop.eup %3630 }
0x11f1   :  { %v3633_v41 = vpop.eup %3632  ;;  %v1746_v42 = vsel %vm291_vm2, %v3631_v40, 0.0 }
0x11f2   :  { %1747 = vadd.xlane.f32.xlu1 %v1746_v42  ;;  %v1743_v43 = vsel %vm291_vm2, %v3633_v41, 0.0 }
0x11f3   :  { %1744 = vadd.xlane.f32.xlu0 %v1743_v43 }
0x1203   :  { %1829 = vrot.lane.b32.xlu1 %v1572_v15, %s3696_s12 }
0x1209   :  { %1753 = vrot.lane.b32.xlu0 %v1567_v17, %s3696_s12 }
0x127f   :  { %v1748_v44 = vpop.xlane.xlu1 %1747 }
0x1280   :  { %3634 = vrcp.f32 %v1748_v44  ;;  %v1745_v48 = vpop.xlane.xlu0 %1744 }
0x1281   :  { %3636 = vrcp.f32 %v1745_v48 }
0x1283   :  { %v1830_v50 = vpop.permute.xlu1 %1829 }
0x1284   :  { %3365 = vmatpush3.msra.mxu1 %v1830_v50  ;;  %v1754_v51 = vpop.permute.xlu0 %1753 }
0x1285   :  { %3360 = vmatpush3.msra.mxu0 %v1754_v51 }
0x1286   :  { %3508 = vmatprep.subr.bf16.mxu0 %v3507_v49 }
0x128a   :  { %v3635_v52 = vpop.eup %3634 }
0x128b   :  { %v3637_v53 = vpop.eup %3636  ;;  %v1752_v54 = vmul.f32 %v3635_v52, %v3631_v40 }
0x128c   :  { %v1751_v55 = vmul.f32 %v3637_v53, %v3633_v41 }
0x128d   :  { %3367 = vmatmul.mubr.msk.f32.vlgmr.msra.gmra.mrb[20].mxu1 %vm291_vm2, %v1752_v54 }
0x128e   :  { %3362 = vmatmul.mubr.msk.f32.vlgmr.msra.gmra.mrb[20].mxu0 %vm291_vm2, %v1751_v55 }
0x128f   :  { %3510 = vmatpush3.bf16.msra.mxu0 %v3507_v49 }
0x1290   :  { %3515 = vmatprep.subr.bf16.mxu0 %v3697_v4 }
0x1360   :  { %v1901_v56 = vpop.f32.mrb[20].mxu1 }
0x1361   :  { %v1825_v57 = vpop.f32.mrb[20].mxu0  ;;  %v3368_v58 = vpop.f32.mrb[21].mxu1 }
0x1362   :  { %v3363_v59 = vpop.f32.mrb[21].mxu0  ;;  %3373 = vmatprep.mubr.msk.f32.mxu0 %vm53_vm0, %v1825_v57 }
0x1363   :  { %3374 = vmatmul.mubr.msk.f32.vlgmr.msra.gmra.mrb[22].mxu0 %vm53_vm0, %v1901_v56 }
0x1364   :  { %3387 = vmatprep.mubr.msk.f32.mxu0 %vm3694_vm1, %v3693_v5 }
0x1436   :  { %v3375_v61 = vpop.f32.mrb[22].mxu0 }
0x1437   :  { %v1990_v62 = vadd.f32 %v3375_v61, %v3092_v60  ;;  %v1984_v36 = vpop.f32.mrb[23].mxu0 }
0x1438   :  { %v1985_v35 = vadd.f32 %v3092_v60, %v1984_v36 }
0x1439   :  { %v1994_v63 = vadd.f32 %v1990_v62, %v3934_v12 }
0x143a   :  { %v1993_v0 = vadd.f32 %v1985_v35, %v3932_v11  ;;  %v2035_v11 = vld [vmem:[#allocation2 + $0x90] sm:$0xff] }
0x143b   :  { %v2000_v1 = vsel %vm53_vm0, %v1994_v63, 0.0  ;;  %v3579_v17 = vpack.i.bf16 %v2036_v16, %v2035_v11  ;;  %v3511_v18 = vpack.c.bf16 %v2036_v16, %v2035_v11 }
0x143c   :  { %2001 = vadd.xlane.f32.xlu0 %v2000_v1  ;;  %v1997_v2 = vsel %vm53_vm0, %v1993_v0, 0.0 }
0x143d   :  { %1998 = vadd.xlane.f32.xlu1 %v1997_v2  ;;  %3512 = vmatprep.subr.bf16.mxu1 %v3511_v18 }
0x143e   :  { %3514 = vmatpush3.bf16.msra.mxu1 %v3511_v18 }
0x143f   :  { %3518 = vmatprep.subr.bf16.mxu1 %v3697_v4 }
0x14c9   :  { %v2002_v3 = vpop.xlane.xlu0 %2001 }
0x14ca   :  { %v2004_v6 = vmul.f32 0.0625, %v2002_v3  ;;  %v1999_v8 = vpop.xlane.xlu1 %1998 }
0x14cb   :  { %v2003_v9 = vmul.f32 0.0625, %v1999_v8 }
0x14cc   :  { %v2006_v7 = vsub.f32 %v1994_v63, %v2004_v6 }
0x14cd   :  { %v2005_v10 = vsub.f32 %v1993_v0, %v2003_v9 }
0x14ce   :  { %v2008_v13 = vmul.f32 %v2006_v7, %v2006_v7 }
0x14cf   :  { %v2007_v14 = vmul.f32 %v2005_v10, %v2005_v10 }
0x14d0   :  { %v2012_v15 = vsel %vm53_vm0, %v2008_v13, 0.0 }
0x14d1   :  { %2013 = vadd.xlane.f32.xlu1 %v2012_v15  ;;  %v2009_v12 = vsel %vm53_vm0, %v2007_v14, 0.0 }
0x14d2   :  { %2010 = vadd.xlane.f32.xlu0 %v2009_v12 }
0x14e2   :  { %2132 = vrot.lane.b32.xlu1 %v3097_v19, %s3695_s0 }
0x14e8   :  { %3580 = vrot.lane.b32.xlu0 %v3579_v17, %s3695_s0 }
0x155e   :  { %v2014_v21 = vpop.xlane.xlu1 %2013 }
0x155f   :  { %v2016_v22 = vmul.f32 0.0625, %v2014_v21  ;;  %v2011_v23 = vpop.xlane.xlu0 %2010 }
0x1560   :  { %v2015_v26 = vmul.f32 0.0625, %v2011_v23 }
0x1561   :  { %v2018_v27 = vadd.f32 1e-05, %v2016_v22 }
0x1562   :  { %v2017_v28 = vadd.f32 1e-05, %v2015_v26 }
0x1563   :  { %3638 = vrsqrt.f32 %v2018_v27  ;;  %v3581_v29 = vpop.permute.xlu0 %3580 }
0x1564   :  { %3640 = vrsqrt.f32 %v2017_v28  ;;  %v3583_v31 = vunpack.i.h.bf16 %v3581_v29  ;;  %v3582_v32 = vunpack.i.l.bf16 %v3581_v29 }
0x1566   :  { %v3516_v33 = vpack.c.bf16 %v3583_v31, %v3582_v32 }
0x1568   :  { %3517 = vmatpush3.bf16.msra.mxu0 %v3516_v33 }
0x1569   :  { %3522 = vmatprep.subr.bf16.mxu0 %v3697_v4 }
0x156b   :  { %3388 = vmatmul.mubr.msk.f32.vlgmr.msra.gmra.mrb[24].mxu0 %vm53_vm0, %v3811_v20  ;;  %v3096_v20 = vld [vmem:[%s4098_s4 + $0x13] ss:$0 sm:$0xff] }
0x156c   :  { %3390 = vmatprep.mubr.msk.f32.mxu0 %vm3694_vm1, %v3693_v5 }
0x156d   :  { %v3639_v34 = vpop.eup %3638 }
0x156e   :  { %v3641_v38 = vpop.eup %3640  ;;  %v2022_v39 = vmul.f32 %v3639_v34, %v2006_v7 }
0x156f   :  { %3391 = vmatmul.mubr.msk.f32.gmra.mrb[26].mxu0 %vm53_vm0, %v3822_v24  ;;  %v2021_v40 = vmul.f32 %v3641_v38, %v2005_v10  ;;  %v2133_v24 = vpop.permute.xlu1 %2132 }
0x1570   :  { %3393 = vmatprep.mubr.msk.f32.mxu0 %vm3694_vm1, %v3693_v5  ;;  %v2028_v41 = vmul.f32 %v3095_v37, %v2022_v39 }
0x1571   :  { %v2027_v42 = vmul.f32 %v3095_v37, %v2021_v40  ;;  %v2561_v40 = vld [vmem:[#allocation2 + $0xa0] sm:$0xff] }
0x1572   :  { %v4004_v44 = vadd.f32 %v3096_v20, %v2028_v41 }
0x1573   :  { %3394 = vmatmul.mubr.msk.f32.gmra.mrb[28].mxu0 %vm53_vm0, %v3834_v30  ;;  %v4002_v43 = vadd.f32 %v3096_v20, %v2027_v42  ;;  %v2562_v20 = vld [vmem:[#allocation2 + $0xa8] sm:$0xff] }
0x1574   :  { %3407 = vmatprep.mubr.msk.f32.mxu0 %vm3694_vm1, %v3693_v5 }
0x1575   :  { %3380 = vmatprep.mubr.msk.f32.mxu1 %vm53_vm0, %v4002_v43 }
0x1576   :  { %3381 = vmatmul.mubr.msk.f32.vlgmr.msra.gmra.mrb[22].mxu1 %vm53_vm0, %v4004_v44 }
0x1577   :  { %3400 = vmatprep.mubr.msk.f32.mxu1 %vm3694_vm1, %v3693_v5 }
0x163e   :  { %v2201_v45 = vpop.f32.mrb[24].mxu0 }
0x163f   :  { %v2202_v47 = vadd.f32 %v2201_v45, %v2133_v24  ;;  %v3389_v30 = vpop.f32.mrb[25].mxu0 }
0x1641   :  { %v2218_v48 = vcombine.high %v2202_v47, %v2202_v47 }
0x1642   :  { %v2206_v49 = vpop.f32.mrb[26].mxu0 }
0x1643   :  { %v2221_v50 = vcombine.low %v2202_v47, %v2218_v48  ;;  %v2207_v51 = vadd.f32 %v2206_v49, %v2133_v24  ;;  %v3392_v52 = vpop.f32.mrb[27].mxu0 }
0x1645   :  { %v3519_v53 = vpack.c.bf16 %v2207_v51, %v2221_v50  ;;  %v3584_v54 = vpack.i.bf16 %v2207_v51, %v2221_v50  ;;  %v2219_v57 = vcombine.high %v2207_v51, %v2207_v51 }
0x1646   :  { %v2211_v55 = vpop.f32.mrb[28].mxu0 }
0x1647   :  { %v2212_v56 = vadd.f32 %v2211_v55, %v2133_v24  ;;  %v3395_v58 = vpop.f32.mrb[29].mxu0  ;;  %3521 = vmatpush3.bf16.xpose.msk.msra.mxu1 %vm3857_vm3, %v3519_v53 }
0x1648   :  { %3526 = vmatprep.subr.bf16.mxu1 %v3697_v4 }
0x1649   :  { %v2220_v59 = vcombine.high %v2212_v56, %v2212_v56  ;;  %v2299_v60 = vcombine.low %v2219_v57, %v2212_v56  ;;  %v3382_v61 = vpop.f32.mrb[22].mxu1 }
0x164a   :  { %v2114_v62 = vpop.f32.mrb[23].mxu1  ;;  %v2120_v0 = vadd.f32 %v3382_v61, %v3097_v19 }
0x164b   :  { %v3523_v36 = vpack.c.bf16 %v2220_v59, %v2299_v60  ;;  %v2115_v35 = vadd.f32 %v3097_v19, %v2114_v62  ;;  %v3589_v63 = vpack.i.bf16 %v2220_v59, %v2299_v60 }
0x164d   :  { %3525 = vmatpush3.bf16.xpose.msk.msra.mxu0 %vm3857_vm3, %v3523_v36  ;;  %v2692_v36 = vld [vmem:[#allocation2 + $0xb8] sm:$0xff] }
0x164e   :  { %3401 = vmatmul.mubr.msk.f32.vlgmr.msra.gmra.mrb[24].mxu1 %vm53_vm0, %v2115_v35 }
0x164f   :  { %3414 = vmatprep.mubr.msk.f32.mxu1 %vm3694_vm1, %v3693_v5 }
0x1654   :  { %3408 = vmatmul.mubr.msk.f32.vlgmr.msra.gmra.mrb[30].mxu0 %vm53_vm0, %v2120_v0  ;;  %v2782_v0 = vld [vmem:[#allocation2 + $0xc8] sm:$0xff] }
0x1721   :  { %v2295_v1 = vpop.f32.mrb[24].mxu1 }
0x1722   :  { %v2377_v2 = vmul.f32 0.25, %v2295_v1  ;;  %v3402_v3 = vpop.f32.mrb[25].mxu1 }
0x1724   :  { %v2379_v6 = vsel %vm950_vm4, %v2377_v2, -inf }
0x1725   :  { %2380 = vmax.xlane.f32.xlu1 %v2379_v6 }
0x1727   :  { %v2373_v8 = vpop.f32.mrb[30].mxu0 }
0x1728   :  { %v2378_v9 = vmul.f32 0.25, %v2373_v8  ;;  %v3409_v7 = vpop.f32.mrb[31].mxu0 }
0x172a   :  { %v2382_v46 = vsel %vm950_vm4, %v2378_v9, -inf }
0x172b   :  { %2383 = vmax.xlane.f32.xlu0 %v2382_v46 }
0x17b2   :  { %v2381_v10 = vpop.xlane.xlu1 %2380 }
0x17b3   :  { %v2385_v13 = vsub.f32 %v2377_v2, %v2381_v10  ;;  %v3116_v10 = vld [vmem:[%s4098_s4 + $0x14] ss:$0 sm:$0xff] }
0x17b5   :  { %v2387_v14 = vmul.f32 1.442695, %v2385_v13 }
0x17b7   :  { %3642 = vpow2.f32 %v2387_v14 }
0x17b8   :  { %v2384_v15 = vpop.xlane.xlu0 %2383 }
0x17b9   :  { %v2386_v12 = vsub.f32 %v2378_v9, %v2384_v15 }
0x17bb   :  { %v2389_v11 = vmul.f32 1.442695, %v2386_v12  ;;  %v3117_v12 = vld [vmem:[%s4098_s4 + $0x15] ss:$0 sm:$0xff] }
0x17bd   :  { %3644 = vpow2.f32 %v2389_v11 }
0x17c1   :  { %v3643_v16 = vpop.eup %3642 }
0x17c2   :  { %v2391_v17 = vsel %vm950_vm4, %v3643_v16, 0.0 }
0x17c3   :  { %2392 = vadd.xlane.f32.xlu0 %v2391_v17 }
0x17c7   :  { %v3645_v18 = vpop.eup %3644 }
0x17c8   :  { %v2394_v19 = vsel %vm950_vm4, %v3645_v18, 0.0 }
0x17c9   :  { %2395 = vadd.xlane.f32.xlu1 %v2394_v19  ;;  %v2783_v19 = vld [vmem:[#allocation2 + $0xd0] sm:$0xff] }
0x17d9   :  { %3585 = vrot.lane.b32.xlu0 %v3584_v54, %s3695_s0 }
0x17da   :  { %3590 = vrot.lane.b32.xlu1 %v3589_v63, %s3695_s0  ;;  %v2781_v63 = vld [vmem:[#allocation2 + $0xc0] sm:$0xff] }
0x17db   :  { %v3542_v1 = vpack.c.bf16 %v2782_v0, %v2781_v63 }
0x1850   :  { %v2393_v21 = vpop.xlane.xlu0 %2392 }
0x1851   :  { %3646 = vrcp.f32 %v2393_v21  ;;  %v2784_v21 = vld [vmem:[#allocation2 + $0xd8] sm:$0xff] }
0x1854   :  { %v3586_v22 = vpop.permute.xlu0 %3585 }
0x1855   :  { %v3588_v23 = vunpack.i.h.bf16 %v3586_v22  ;;  %v3587_v26 = vunpack.i.l.bf16 %v3586_v22  ;;  %v3546_v22 = vpack.c.bf16 %v2784_v21, %v2783_v19 }
0x1856   :  { %v2396_v27 = vpop.xlane.xlu1 %2395 }
0x1857   :  { %v3527_v28 = vpack.c.bf16 %v3588_v23, %v3587_v26  ;;  %3648 = vrcp.f32 %v2396_v27  ;;  %v3118_v23 = vld [vmem:[%s4098_s4 + $0x10] ss:$0 sm:$0xff] }
0x1859   :  { %3529 = vmatpush3.bf16.msk.msra.mxu1 %vm3878_vm7, %v3527_v28 }
0x185a   :  { %v3591_v29 = vpop.permute.xlu1 %3590  ;;  %3530 = vmatprep.subr.bf16.mxu1 %v3697_v4  ;;  %v3534_v4 = vpack.c.bf16 %v2562_v20, %v2561_v40 }
0x185b   :  { %v3647_v31 = vpop.eup %3646  ;;  %v3593_v32 = vunpack.i.h.bf16 %v3591_v29  ;;  %v3592_v33 = vunpack.i.l.bf16 %v3591_v29 }
0x185c   :  { %v2399_v34 = vmul.f32 %v3647_v31, %v3643_v16  ;;  %3535 = vmatprep.subr.bf16.mxu0 %v3534_v4 }
0x185d   :  { %v3531_v37 = vpack.c.bf16 %v3593_v32, %v3592_v33  ;;  %3537 = vmatpush3.bf16.msra.mxu0 %v3534_v4  ;;  %v3121_v33 = vld [vmem:[%s4098_s4 + $0x11] ss:$0 sm:$0xff] }
0x185e   :  { %3415 = vmatmul.mubr.msk.f32.vlgmr.msra.gmra.mrb[26].mxu1 %vm950_vm4, %v2399_v34  ;;  %3543 = vmatprep.subr.bf16.mxu0 %v3542_v1 }
0x185f   :  { %3533 = vmatpush3.bf16.msk.msra.mxu1 %vm3878_vm7, %v3531_v37  ;;  %3421 = vmatprep.mubr.msk.f32.mxu1 %vm3694_vm1, %v3693_v5 }
0x1861   :  { %v3649_v38 = vpop.eup %3648 }
0x1862   :  { %v2400_v39 = vmul.f32 %v3649_v38, %v3645_v18 }
0x1864   :  { %3422 = vmatmul.mubr.msk.f32.vlgmr.msra.gmra.mrb[28].mxu1 %vm950_vm4, %v2400_v39 }
0x1931   :  { %v2477_v41 = vpop.f32.mrb[26].mxu1 }
0x1932   :  { %v3416_v42 = vpop.f32.mrb[27].mxu1  ;;  %3428 = vmatprep.mubr.msk.f32.mxu0 %vm53_vm0, %v2477_v41 }
0x1937   :  { %v2557_v24 = vpop.f32.mrb[28].mxu1 }
0x1938   :  { %v3423_v45 = vpop.f32.mrb[29].mxu1  ;;  %3429 = vmatmul.mubr.msk.f32.vlgmr.msra.gmra.mrb[32].mxu0 %vm53_vm0, %v2557_v24 }
0x1939   :  { %3545 = vmatpush3.bf16.msra.mxu0 %v3542_v1 }
0x193a   :  { %3547 = vmatprep.subr.bf16.mxu0 %v3546_v22 }
0x193d   :  { %3549 = vmatpush3.bf16.msra.mxu0 %v3546_v22 }
0x1a0b   :  { %v3430_v47 = vpop.f32.mrb[32].mxu0 }
0x1a0c   :  { %v2646_v30 = vadd.f32 %v3430_v47, %v3113_v25  ;;  %v2640_v48 = vpop.f32.mrb[33].mxu0 }
0x1a0d   :  { %v2641_v49 = vadd.f32 %v3113_v25, %v2640_v48 }
0x1a0e   :  { %v2650_v50 = vadd.f32 %v2646_v30, %v4004_v44 }
0x1a0f   :  { %v2649_v51 = vadd.f32 %v2641_v49, %v4002_v43  ;;  %v2691_v43 = vld [vmem:[#allocation2 + $0xb0] sm:$0xff] }
0x1a10   :  { %v2656_v52 = vsel %vm53_vm0, %v2650_v50, 0.0  ;;  %v3538_v35 = vpack.c.bf16 %v2692_v36, %v2691_v43 }
0x1a11   :  { %2657 = vadd.xlane.f32.xlu0 %v2656_v52  ;;  %v2653_v53 = vsel %vm53_vm0, %v2649_v51, 0.0  ;;  %v2913_v52 = vld [vmem:[#allocation2 + $0xe0] sm:$0xff] }
0x1a12   :  { %2654 = vadd.xlane.f32.xlu1 %v2653_v53  ;;  %3539 = vmatprep.subr.bf16.mxu1 %v3538_v35  ;;  %v2914_v53 = vld [vmem:[#allocation2 + $0xe8] sm:$0xff] }
0x1a13   :  { %3541 = vmatpush3.bf16.msra.mxu1 %v3538_v35  ;;  %v3125_v35 = vld [vmem:[%s4098_s4 + $0x17] ss:$0 sm:$0xff] }
0x1a9e   :  { %v2658_v54 = vpop.xlane.xlu0 %2657 }
0x1a9f   :  { %v2660_v55 = vmul.f32 0.0625, %v2658_v54  ;;  %v2655_v56 = vpop.xlane.xlu1 %2654  ;;  %v3550_v54 = vpack.c.bf16 %v2914_v53, %v2913_v52 }
0x1aa0   :  { %v2659_v57 = vmul.f32 0.0625, %v2655_v56 }
0x1aa1   :  { %v2662_v58 = vsub.f32 %v2650_v50, %v2660_v55  ;;  %3551 = vmatprep.subr.bf16.mxu1 %v3550_v54 }
0x1aa2   :  { %v2661_v59 = vsub.f32 %v2649_v51, %v2659_v57 }
0x1aa3   :  { %v2664_v60 = vmul.f32 %v2662_v58, %v2662_v58 }
0x1aa4   :  { %v2663_v61 = vmul.f32 %v2661_v59, %v2661_v59 }
0x1aa5   :  { %v2668_v62 = vsel %vm53_vm0, %v2664_v60, 0.0 }
0x1aa6   :  { %2669 = vadd.xlane.f32.xlu1 %v2668_v62  ;;  %v2665_v44 = vsel %vm53_vm0, %v2663_v61, 0.0  ;;  %v3124_v62 = vld [vmem:[%s4098_s4 + $0x16] ss:$0 sm:$0xff] }
0x1aa7   :  { %2666 = vadd.xlane.f32.xlu0 %v2665_v44 }
0x1b33   :  { %v2670_v2 = vpop.xlane.xlu1 %2669 }
0x1b34   :  { %v2672_v3 = vmul.f32 0.0625, %v2670_v2  ;;  %v2667_v6 = vpop.xlane.xlu0 %2666 }
0x1b35   :  { %v2671_v8 = vmul.f32 0.0625, %v2667_v6 }
0x1b36   :  { %v2674_v9 = vadd.f32 1e-05, %v2672_v3  ;;  %v3126_v3 = vld [vmem:[%s4098_s4 + $0x18] ss:$0 sm:$0xff]  ;;  %s3699_s4 = smov 1  }
0x1b37   :  { %v2673_v7 = vadd.f32 1e-05, %v2671_v8  ;;  %v3014_v8 = vld [vmem:[%s4096_s2 + $0x8] sm:$0xff] }
0x1b38   :  { %3650 = vrsqrt.f32 %v2674_v9 }
0x1b39   :  { %3652 = vrsqrt.f32 %v2673_v7 }
0x1b42   :  { %v3651_v46 = vpop.eup %3650 }
0x1b43   :  { %v3653_v13 = vpop.eup %3652  ;;  %v2678_v14 = vmul.f32 %v3651_v46, %v2662_v58  ;;  %v3013_v46 = vld [vmem:[%s4096_s2] sm:$0xff] }
0x1b44   :  { %v2677_v15 = vmul.f32 %v3653_v13, %v2661_v59 }
0x1b45   :  { %v2684_v11 = vmul.f32 %v3116_v10, %v2678_v14 }
0x1b46   :  { %v2683_v16 = vmul.f32 %v3116_v10, %v2677_v15 }
0x1b47   :  { %v2690_v18 = vadd.f32 %v3117_v12, %v2684_v11 }
0x1b48   :  { %v2689_v17 = vadd.f32 %v3117_v12, %v2683_v16 }
0x1b4a   :  { %3435 = vmatprep.mubr.msk.f32.mxu1 %vm53_vm0, %v2689_v17 }
0x1b4b   :  { %3436 = vmatmul.mubr.msk.f32.vlgmr.msra.gmra.mrb[30].mxu1 %vm53_vm0, %v2690_v18 }
0x1b4c   :  { %3553 = vmatpush3.bf16.msra.mxu1 %v3550_v54 }
0x1c1e   :  { %v3437_v26 = vpop.f32.mrb[30].mxu1 }
0x1c1f   :  { %v2776_v27 = vadd.f32 %v3437_v26, %v3118_v23  ;;  %v2770_v28 = vpop.f32.mrb[31].mxu1 }
0x1c20   :  { %v2771_v29 = vadd.f32 %v3118_v23, %v2770_v28 }
0x1c21   :  { %v2780_v32 = vmax.f32 %v2776_v27, 0.0 }
0x1c22   :  { %v2779_v31 = vmax.f32 %v2771_v29, 0.0 }
0x1c24   :  { %3446 = vmatprep.mubr.msk.f32.mxu0 %vm1363_vm8, %v2779_v31 }
0x1c25   :  { %3447 = vmatmul.mubr.msk.f32.vlgmr.msra.gmra.mrb[34].mxu0 %vm1363_vm8, %v2780_v32 }
0x1cf8   :  { %v3448_v34 = vpop.f32.mrb[34].mxu0 }
0x1cf9   :  { %v2868_v37 = vadd.f32 %v3448_v34, %v3121_v33  ;;  %v2862_v38 = vpop.f32.mrb[35].mxu0 }
0x1cfa   :  { %v2863_v39 = vadd.f32 %v3121_v33, %v2862_v38 }
0x1cfb   :  { %v2872_v40 = vadd.f32 %v2868_v37, %v2690_v18 }
0x1cfc   :  { %v2871_v20 = vadd.f32 %v2863_v39, %v2689_v17 }
0x1cfd   :  { %v2878_v4 = vsel %vm53_vm0, %v2872_v40, 0.0 }
0x1cfe   :  { %2879 = vadd.xlane.f32.xlu1 %v2878_v4  ;;  %v2875_v41 = vsel %vm53_vm0, %v2871_v20, 0.0 }
0x1cff   :  { %2876 = vadd.xlane.f32.xlu0 %v2875_v41 }
0x1d8b   :  { %v2880_v42 = vpop.xlane.xlu1 %2879 }
0x1d8c   :  { %v2882_v24 = vmul.f32 0.0625, %v2880_v42  ;;  %v2877_v45 = vpop.xlane.xlu0 %2876 }
0x1d8d   :  { %v2881_v25 = vmul.f32 0.0625, %v2877_v45 }
0x1d8e   :  { %v2884_v47 = vsub.f32 %v2872_v40, %v2882_v24 }
0x1d8f   :  { %v2883_v30 = vsub.f32 %v2871_v20, %v2881_v25 }
0x1d90   :  { %v2886_v48 = vmul.f32 %v2884_v47, %v2884_v47 }
0x1d91   :  { %v2885_v49 = vmul.f32 %v2883_v30, %v2883_v30 }
0x1d92   :  { %v2890_v50 = vsel %vm53_vm0, %v2886_v48, 0.0 }
0x1d93   :  { %2891 = vadd.xlane.f32.xlu1 %v2890_v50  ;;  %v2887_v51 = vsel %vm53_vm0, %v2885_v49, 0.0 }
0x1d94   :  { %2888 = vadd.xlane.f32.xlu0 %v2887_v51 }
0x1e20   :  { %v2892_v55 = vpop.xlane.xlu1 %2891 }
0x1e21   :  { %v2894_v56 = vmul.f32 0.0625, %v2892_v55  ;;  %v2889_v57 = vpop.xlane.xlu0 %2888 }
0x1e22   :  { %v2893_v58 = vmul.f32 0.0625, %v2889_v57 }
0x1e23   :  { %v2896_v59 = vadd.f32 1e-05, %v2894_v56 }
0x1e24   :  { %v2895_v60 = vadd.f32 1e-05, %v2893_v58 }
0x1e25   :  { %3654 = vrsqrt.f32 %v2896_v59 }
0x1e26   :  { %3656 = vrsqrt.f32 %v2895_v60 }
0x1e2f   :  { %v3655_v61 = vpop.eup %3654 }
0x1e30   :  { %v3657_v44 = vpop.eup %3656  ;;  %v2900_v43 = vmul.f32 %v3655_v61, %v2884_v47 }
0x1e31   :  { %v2899_v36 = vmul.f32 %v3657_v44, %v2883_v30 }
0x1e32   :  { %v2906_v63 = vmul.f32 %v3124_v62, %v2900_v43 }
0x1e33   :  { %v2905_v0 = vmul.f32 %v3124_v62, %v2899_v36 }
0x1e34   :  { %v2912_v2 = vadd.f32 %v3125_v35, %v2906_v63 }
0x1e35   :  { %v2911_v1 = vadd.f32 %v3125_v35, %v2905_v0 }
0x1e37   :  { %3453 = vmatprep.mubr.msk.f32.mxu1 %vm53_vm0, %v2911_v1 }
0x1e38   :  { %3454 = vmatmul.mubr.msk.f32.vlgmr.msra.gmra.mrb[32].mxu1 %vm53_vm0, %v2912_v2 }
0x1f0b   :  { %v3455_v6 = vpop.f32.mrb[32].mxu1 }
0x1f0c   :  { %v2998_v9 = vadd.f32 %v3455_v6, %v3126_v3  ;;  %v2992_v7 = vpop.f32.mrb[33].mxu1 }
0x1f0d   :  { %v2993_v10 = vadd.f32 %v3126_v3, %v2992_v7 }
0x1f0e   :  { %v3016_v13 = vadd.f32 %v3014_v8, %v2998_v9  ;;  %v3002_v16 = vsub.f32 0.0, %v2998_v9 }
0x1f0f   :  { %v3015_v14 = vadd.f32 %v3013_v46, %v2993_v10  ;;  %v3001_v17 = vsub.f32 0.0, %v2993_v10 }
0x1f10   :  { %vm3018_vm9 = vcmp.gt.f32.partialorder %v3016_v13, 0.0  ;;  %v3005_v18 = vmul.f32 1.442695, %v3002_v16 }
0x1f11   :  { %v3020_v15 = vsel %vm3018_vm9, 1.0, %v3693_v5  ;;  %vm3017_vm10 = vcmp.gt.f32.partialorder %v3015_v14, 0.0  ;;  %v3003_v19 = vmul.f32 1.442695, %v3001_v17 }
0x1f12   :  { %v3019_v12 = vsel %vm3017_vm10, 1.0, %v3693_v5  ;;  %3658 = vpow2.f32 %v3005_v18 }
0x1f13   :  { %v3594_v11 = vpack.i.bf16 %v3020_v15, %v3019_v12  ;;  %3660 = vpow2.f32 %v3003_v19 }
0x1f15   :  { %3595 = vrot.lane.b32.xlu0 %v3594_v11, %s3699_s4 }
0x1f1c   :  { %v3659_v21 = vpop.eup %3658 }
0x1f1d   :  { %v3661_v22 = vpop.eup %3660  ;;  %v3008_v23 = vadd.f32 1.0, %v3659_v21 }
0x1f1e   :  { %v3007_v26 = vadd.f32 1.0, %v3661_v22 }
0x1f1f   :  { %3662 = vrcp.f32 %v3008_v23 }
0x1f20   :  { %3664 = vrcp.f32 %v3007_v26 }
0x1f29   :  { %v3663_v28 = vpop.eup %3662 }
0x1f2a   :  { %v3665_v31 = vpop.eup %3664 }
0x1f87   :  { %v3596_v27 = vpop.permute.xlu0 %3595 }
0x1f88   :  { %v3598_v5 = vunpack.i.h.bf16 %v3596_v27  ;;  %v3597_v29 = vunpack.i.l.bf16 %v3596_v27 }
0x1f8a   :  { %v3031_v32 = vsel %vm3029_vm11, %v3663_v28, %v3598_v5  ;;  %v3030_v33 = vsel %vm3029_vm11, %v3665_v31, %v3597_v29 }
0x1f8b   :  { %3034 = vst.msk [vmem:[%s4099_s5 + $0x8] sm:$0xff] %vm3032_vm12, %v3031_v32  ;;  %3033 = vst.msk [vmem:[%s4099_s5] sm:$0xff] %vm3032_vm12, %v3030_v33 }
0x1f8c   :  { %3039 = vsyncpa [#allocation3], 1 }

</bundles_post_ra>
